<compile_context>
chip_gen: v7x
topology: tpu7x:2x2x1
jax: 0.10.0
libtpu: 0.0.40
codegen_flags: <defaults>
</compile_context>

<pallas_src>
import math
from functools import partial

import jax
import jax.numpy as jnp
from jax.experimental import pallas as pl
from jax.experimental.pallas import tpu as pltpu


# --------------------------------------------------------------------------- #
# Pallas kernels
# --------------------------------------------------------------------------- #

def _gcn_conv_kernel(a_ref, dr_ref, dc_ref, x_ref, w_ref, b_ref, ws_ref,
                     y_ref, z_ref, acc_ref, *, n, tm, tk):
    """One (row-tile, col-tile) step of  Y = relu(A_norm @ X @ W + b).

    A_norm = D^-1/2 (A_raw + I) D^-1/2 is built on the fly from the raw bf16
    adjacency tile + the d^-1/2 vector (norm fused, no A_norm in HBM).
    Epilogue (last col tile): also emits  z = Y @ w_score^T  (tm, 1).
    """
    i = pl.program_id(0)
    k = pl.program_id(1)

    @pl.when(k == 0)
    def _():
        acc_ref[...] = jnp.zeros_like(acc_ref)

    # Normalized adjacency tile (f32 for the norm factors).
    a = a_ref[...].astype(jnp.float32)                                   # (tm, tk)
    rows = i * tm + jax.lax.broadcasted_iota(jnp.int32, (tm, tk), 0)
    cols = k * tk + jax.lax.broadcasted_iota(jnp.int32, (tm, tk), 1)
    a = a + (rows == cols).astype(jnp.float32)                           # + I
    a = a * dr_ref[...] * dc_ref[...]                                    # D^-1/2 A D^-1/2
    a = jnp.where(cols < n, a, 0.0)                                      # mask padded cols

    x = x_ref[...]                                                       # (tk, cin) bf16
    xrows = k * tk + jax.lax.broadcasted_iota(jnp.int32, x.shape, 0)
    x = jnp.where(xrows < n, x, jnp.zeros_like(x))                       # mask padded rows

    # bf16 MXU matmul, f32 accumulation.
    acc_ref[...] += jnp.dot(a.astype(jnp.bfloat16), x,
                            preferred_element_type=jnp.float32)

    @pl.when(k == pl.num_programs(1) - 1)
    def _():
        y = jnp.dot(acc_ref[...], w_ref[...],
                    preferred_element_type=jnp.float32) + b_ref[...]
        y = jnp.maximum(y, 0.0)                                          # ReLU
        y_ref[...] = y
        # Epilogue: SAGPool pre-aggregation score  z = y @ w_score^T.
        z_ref[...] = jnp.sum(y * ws_ref[...], axis=-1, keepdims=True)


def gcn_conv_score(a_raw, d_inv_sqrt, x, w, b, w_score, *, tm=512, tk=1024):
    """Fused GCNConv + ReLU + score projection.

    Returns (x_new [N, Cout] f32, z [N, 1] f32) with z = x_new @ w_score^T.
    """
    n, cin = x.shape
    cout = w.shape[1]
    tm = min(tm, n)
    tk = min(tk, n)
    grid = (pl.cdiv(n, tm), pl.cdiv(n, tk))

    cost = pl.CostEstimate(
        flops=2 * n * n * cin + 2 * n * cin * cout,
        transcendentals=0,
        bytes_accessed=n * n * 2 + grid[0] * n * cin * 2 + n * cout * 4,
    )

    return pl.pallas_call(
        partial(_gcn_conv_kernel, n=n, tm=tm, tk=tk),
        out_shape=(jax.ShapeDtypeStruct((n, cout), jnp.float32),
                   jax.ShapeDtypeStruct((n, 1), jnp.float32)),
        grid_spec=pltpu.PrefetchScalarGridSpec(
            num_scalar_prefetch=0,
            grid=grid,
            in_specs=[
                pl.BlockSpec((tm, tk), lambda i, k: (i, k)),     # raw A (bf16)
                pl.BlockSpec((tm, 1), lambda i, k: (i, 0)),      # d^-1/2 row slice
                pl.BlockSpec((1, tk), lambda i, k: (0, k)),      # d^-1/2 col slice
                pl.BlockSpec((tk, cin), lambda i, k: (k, 0)),    # X tile (bf16)
                pl.BlockSpec((cin, cout), lambda i, k: (0, 0)),  # W
                pl.BlockSpec((1, cout), lambda i, k: (0, 0)),    # bias
                pl.BlockSpec((1, cout), lambda i, k: (0, 0)),    # score weight row
            ],
            out_specs=[
                pl.BlockSpec((tm, cout), lambda i, k: (i, 0)),
                pl.BlockSpec((tm, 1), lambda i, k: (i, 0)),
            ],
            scratch_shapes=[pltpu.VMEM((tm, cin), jnp.float32)],
        ),
        compiler_params=pltpu.CompilerParams(
            dimension_semantics=("parallel", "arbitrary")),
        cost_estimate=cost,
    )(a_raw.astype(jnp.bfloat16),
      d_inv_sqrt.reshape(n, 1),
      d_inv_sqrt.reshape(1, n),
      x.astype(jnp.bfloat16),
      w, b, w_score)


def _sag_score_kernel(a_ref, dr_ref, dc_ref, z_ref, b_ref, s_ref, acc_ref,
                      *, n, tm, tk):
    """score = A_norm @ z + b, one (row-tile, col-tile) step.

    The width-1 contraction runs on the VPU (mul) + XLU (lane reduce); the
    only large stream is the raw bf16 adjacency tile.
    """
    i = pl.program_id(0)
    k = pl.program_id(1)

    @pl.when(k == 0)
    def _():
        acc_ref[...] = jnp.zeros_like(acc_ref)

    a = a_ref[...].astype(jnp.float32)                                   # (tm, tk)
    rows = i * tm + jax.lax.broadcasted_iota(jnp.int32, (tm, tk), 0)
    cols = k * tk + jax.lax.broadcasted_iota(jnp.int32, (tm, tk), 1)
    a = a + (rows == cols).astype(jnp.float32)
    a = a * dr_ref[...] * dc_ref[...]
    contrib = jnp.where(cols < n, a * z_ref[...], 0.0)                   # mask pad cols
    acc_ref[...] += jnp.sum(contrib, axis=-1, keepdims=True)

    @pl.when(k == pl.num_programs(1) - 1)
    def _():
        s_ref[...] = acc_ref[...] + b_ref[0]


def sag_score(a_raw, d_inv_sqrt, z, b_scalar, *, tm=512, tk=1024):
    """SAGPool score layer (GCNConv(C,1) applied to x_new): A_norm @ z + b."""
    n = a_raw.shape[0]
    tm = min(tm, n)
    tk = min(tk, n)
    grid = (pl.cdiv(n, tm), pl.cdiv(n, tk))

    cost = pl.CostEstimate(flops=2 * n * n, transcendentals=0,
                           bytes_accessed=n * n * 2 + n * 8)

    return pl.pallas_call(
        partial(_sag_score_kernel, n=n, tm=tm, tk=tk),
        out_shape=jax.ShapeDtypeStruct((n, 1), jnp.float32),
        grid_spec=pltpu.PrefetchScalarGridSpec(
            num_scalar_prefetch=0,
            grid=grid,
            in_specs=[
                pl.BlockSpec((tm, tk), lambda i, k: (i, k)),     # raw A (bf16)
                pl.BlockSpec((tm, 1), lambda i, k: (i, 0)),      # d^-1/2 row slice
                pl.BlockSpec((1, tk), lambda i, k: (0, k)),      # d^-1/2 col slice
                pl.BlockSpec((1, tk), lambda i, k: (0, k)),      # z, lane-major
                pl.BlockSpec(memory_space=pltpu.MemorySpace.SMEM),  # scalar bias
            ],
            out_specs=pl.BlockSpec((tm, 1), lambda i, k: (i, 0)),
            scratch_shapes=[pltpu.VMEM((tm, 1), jnp.float32)],
        ),
        compiler_params=pltpu.CompilerParams(
            dimension_semantics=("parallel", "arbitrary")),
        cost_estimate=cost,
    )(a_raw.astype(jnp.bfloat16),
      d_inv_sqrt.reshape(n, 1),
      d_inv_sqrt.reshape(1, n),
      z.reshape(1, n),
      b_scalar)


# --------------------------------------------------------------------------- #
# Glue (plain JAX, all on device)
# --------------------------------------------------------------------------- #

def edges_to_dense_adj(edge_index, num_nodes):
    """Raw dense adjacency with A[target, source] += 1 (PyG scatter semantics).

    Kept in bf16 end-to-end: multiplicities are small integers (exact in bf16)
    and the adjacency is the model's dominant HBM stream.
    """
    row, col = edge_index[0], edge_index[1]
    a = jnp.zeros((num_nodes, num_nodes), jnp.float32).at[col, row].add(1.0)
    return a.astype(jnp.bfloat16)


def gcn_degree_inv_sqrt(a_raw):
    """d^-1/2 of (A_raw + I), matching PyG gcn_norm(add_self_loops=True)."""
    deg = jnp.sum(a_raw.astype(jnp.float32), axis=1) + 1.0
    return jax.lax.rsqrt(deg)


def sag_block(x, a_raw, batch, conv_w, conv_b, score_w, score_b, *, ratio):
    """One  x = relu(GCNConv(x));  x, graph = SAGPool(x);  readout  block."""
    n = x.shape[0]
    d_inv_sqrt = gcn_degree_inv_sqrt(a_raw)

    # GCNConv + ReLU + score-projection epilogue (Pallas, norm fused in-kernel).
    x_new, z = gcn_conv_score(a_raw, d_inv_sqrt, x, conv_w, conv_b, score_w)

    # SAGPool score layer = GCNConv(C, 1): score = A_norm @ z + b   (Pallas).
    score = sag_score(a_raw, d_inv_sqrt, z, score_b)

    # top-k pooling + tanh gate on the k surviving rows only (plain XLA).
    k = int(math.ceil(ratio * n))
    _, perm = jax.lax.top_k(score[:, 0], k)
    perm = perm.astype(jnp.int32)
    x_p = jnp.take(x_new, perm, axis=0) * jnp.tanh(jnp.take(score, perm, axis=0))
    batch_p = jnp.take(batch, perm, axis=0)

    # filter_adj on device: surviving sub-adjacency, already relabeled.
    # TODO(synk): could be a Pallas gather kernel with perm prefetched in SMEM.
    a_p = jnp.take(jnp.take(a_raw, perm, axis=0), perm, axis=1)

    # Single-graph readout  cat([gmp, gap], dim=1).
    # TODO(synk): multi-graph (segment) gmp/gap and per-graph top-k not implemented.
    readout = jnp.concatenate(
        [jnp.max(x_p, axis=0, keepdims=True), jnp.mean(x_p, axis=0, keepdims=True)],
        axis=1)
    return x_p, a_p, batch_p, readout


def sagnet_forward(params, x, edge_index, batch=None, *, ratio=0.8):
    n = x.shape[0]
    if batch is None:
        batch = jnp.zeros((n,), dtype=jnp.int32)
    a_raw = edges_to_dense_adj(edge_index, n)

    x, a_raw, batch, x1 = sag_block(
        x, a_raw, batch, params["conv1_w"], params["conv1_b"],
        params["pool1_w"], params["pool1_b"], ratio=ratio)
    x, a_raw, batch, x2 = sag_block(
        x, a_raw, batch, params["conv2_w"], params["conv2_b"],
        params["pool2_w"], params["pool2_b"], ratio=ratio)
    x, a_raw, batch, x3 = sag_block(
        x, a_raw, batch, params["conv3_w"], params["conv3_b"],
        params["pool3_w"], params["pool3_b"], ratio=ratio)

    # x = relu(lin1(x1 + x2 + x3)) — a (1, 2*nhid) matvec: plain XLA (a kernel
    # launch would cost more than the op; XLA fuses the readout add into it).
    h = x1 + x2 + x3
    return jnp.maximum(h @ params["lin1_w"] + params["lin1_b"], 0.0)


# --------------------------------------------------------------------------- #
# main
# --------------------------------------------------------------------------- #

if __name__ == "__main__":
    key = jax.random.PRNGKey(0)
    N, E = 16, 48                 # nodes, edges (single graph)
    num_features, nhid = 16, 32
    ratio = 0.8

    keys = jax.random.split(key, 10)
    x = jax.random.normal(keys[0], (N, num_features), dtype=jnp.float32)
    edge_index = jax.random.randint(keys[1], (2, E), 0, N, dtype=jnp.int32)

    def glorot(k, shape):
        limit = math.sqrt(6.0 / (shape[0] + shape[1]))
        return jax.random.uniform(k, shape, jnp.float32, -limit, limit)

    params = dict(
        conv1_w=glorot(keys[2], (num_features, nhid)),
        conv1_b=jnp.zeros((1, nhid), jnp.float32),
        pool1_w=glorot(keys[3], (1, nhid)),
        pool1_b=jnp.zeros((1,), jnp.float32),
        conv2_w=glorot(keys[4], (nhid, nhid)),
        conv2_b=jnp.zeros((1, nhid), jnp.float32),
        pool2_w=glorot(keys[5], (1, nhid)),
        pool2_b=jnp.zeros((1,), jnp.float32),
        conv3_w=glorot(keys[6], (nhid, nhid)),
        conv3_b=jnp.zeros((1, nhid), jnp.float32),
        pool3_w=glorot(keys[7], (1, nhid)),
        pool3_b=jnp.zeros((1,), jnp.float32),
        lin1_w=glorot(keys[8], (2 * nhid, nhid)),
        lin1_b=jnp.zeros((1, nhid), jnp.float32),
    )

    fwd = jax.jit(partial(sagnet_forward, ratio=ratio))
    out = fwd(params, x, edge_index)
    out = jax.block_until_ready(out)

    assert out.shape == (1, nhid), out.shape
    assert bool(jnp.all(jnp.isfinite(out)))
    print("KERNEL_OK")
</pallas_src>

<mosaic_0001>
module attributes {stable_mosaic.version = 11 : i64} {
  func.func private @main(%arg0: i32) attributes {dimension_semantics = [#tpu.dimension_semantics<core_parallel>], iteration_bounds = array<i64: 2>, tpu.core_type = #tpu.core_type<sc_scalar_subcore>, window_params = []} {
    return
  }
}

module attributes {stable_mosaic.version = 11 : i64} {
  func.func private @main(%arg0: i32) attributes {dimension_semantics = [#tpu.dimension_semantics<core_parallel>], iteration_bounds = array<i64: 2>, tpu.core_type = #tpu.core_type<sc_scalar_subcore>, window_params = []} {
    return
  }
}

module attributes {stable_mosaic.version = 11 : i64} {
  func.func @_gcn_conv_kernel(%arg0: i32, %arg1: i32, %arg2: memref<16x16xbf16, #tpu.memory_space<vmem>>, %arg3: memref<16x1xf32, #tpu.memory_space<vmem>>, %arg4: memref<1x16xf32, #tpu.memory_space<vmem>>, %arg5: memref<16x16xbf16, #tpu.memory_space<vmem>>, %arg6: memref<16x32xf32, #tpu.memory_space<vmem>>, %arg7: memref<1x32xf32, #tpu.memory_space<vmem>>, %arg8: memref<1x32xf32, #tpu.memory_space<vmem>>, %arg9: memref<16x32xf32, #tpu.memory_space<vmem>>, %arg10: memref<16x1xf32, #tpu.memory_space<vmem>>, %arg11: memref<16x16xf32, #tpu.memory_space<vmem>>) attributes {dimension_semantics = [#tpu.dimension_semantics<parallel>, #tpu.dimension_semantics<arbitrary>], iteration_bounds = array<i64: 1, 1>, scalar_prefetch = 0 : i64, scratch_operands = 1 : i64, tpu.core_type = #tpu.core_type<tc>, window_params = [{transform_indices = @transform_0, window_bounds = array<i64: 16, 16>}, {transform_indices = @transform_1, window_bounds = array<i64: 16, 1>}, {transform_indices = @transform_2, window_bounds = array<i64: 1, 16>}, {transform_indices = @transform_3, window_bounds = array<i64: 16, 16>}, {pipeline_mode = #tpu.pipeline_mode<synchronous>, transform_indices = @transform_4, window_bounds = array<i64: 16, 32>}, {pipeline_mode = #tpu.pipeline_mode<synchronous>, transform_indices = @transform_5, window_bounds = array<i64: 1, 32>}, {pipeline_mode = #tpu.pipeline_mode<synchronous>, transform_indices = @transform_6, window_bounds = array<i64: 1, 32>}, {transform_indices = @transform_7, window_bounds = array<i64: 16, 32>}, {transform_indices = @transform_8, window_bounds = array<i64: 16, 1>}]} {
    %c0_i32 = arith.constant 0 : i32
    %0 = arith.cmpi eq, %arg1, %c0_i32 : i32
    %1 = arith.extui %0 : i1 to i32
    %c0_i32_0 = arith.constant 0 : i32
    %2 = arith.cmpi ne, %1, %c0_i32_0 : i32
    scf.if %2 {
      %cst_20 = arith.constant 0.000000e+00 : f32
      %44 = vector.broadcast %cst_20 : f32 to vector<16x16xf32>
      %c0_21 = arith.constant 0 : index
      %c0_22 = arith.constant 0 : index
      %45 = vector.load %arg11[%c0_21, %c0_22] : memref<16x16xf32, #tpu.memory_space<vmem>>, vector<16x16xf32>
      tpu.vector_store %arg11[%c0_21, %c0_22], %44 {strides = array<i32>} : memref<16x16xf32, #tpu.memory_space<vmem>>, vector<16x16xf32>,
    } else {
    }
    %c0 = arith.constant 0 : index
    %c0_1 = arith.constant 0 : index
    %3 = vector.load %arg2[%c0, %c0_1] : memref<16x16xbf16, #tpu.memory_space<vmem>>, vector<16x16xbf16>
    %4 = arith.extf %3 : vector<16x16xbf16> to vector<16x16xf32>
    %c16_i32 = arith.constant 16 : i32
    %5 = arith.muli %arg0, %c16_i32 : i32
    %6 = tpu.iota {dimensions = array<i32: 0>} : vector<16x16xi32>
    %7 = vector.broadcast %5 : i32 to vector<16x16xi32>
    %8 = arith.addi %7, %6 : vector<16x16xi32>
    %c16_i32_2 = arith.constant 16 : i32
    %9 = arith.muli %arg1, %c16_i32_2 : i32
    %10 = tpu.iota {dimensions = array<i32: 1>} : vector<16x16xi32>
    %11 = vector.broadcast %9 : i32 to vector<16x16xi32>
    %12 = arith.addi %11, %10 : vector<16x16xi32>
    %13 = arith.cmpi eq, %8, %12 : vector<16x16xi32>
    %14 = arith.extui %13 : vector<16x16xi1> to vector<16x16xi32>
    %15 = arith.sitofp %14 : vector<16x16xi32> to vector<16x16xf32>
    %16 = arith.addf %4, %15 : vector<16x16xf32>
    %c0_3 = arith.constant 0 : index
    %c0_4 = arith.constant 0 : index
    %17 = vector.load %arg3[%c0_3, %c0_4] : memref<16x1xf32, #tpu.memory_space<vmem>>, vector<16x1xf32>
    %18 = vector.broadcast %17 : vector<16x1xf32> to vector<16x16xf32>
    %19 = arith.mulf %16, %18 : vector<16x16xf32>
    %c0_5 = arith.constant 0 : index
    %c0_6 = arith.constant 0 : index
    %20 = vector.load %arg4[%c0_5, %c0_6] : memref<1x16xf32, #tpu.memory_space<vmem>>, vector<1x16xf32>
    %21 = vector.broadcast %20 : vector<1x16xf32> to vector<16x16xf32>
    %22 = arith.mulf %19, %21 : vector<16x16xf32>
    %c16_i32_7 = arith.constant 16 : i32
    %23 = vector.broadcast %c16_i32_7 : i32 to vector<16x16xi32>
    %24 = arith.cmpi slt, %12, %23 : vector<16x16xi32>
    %cst = arith.constant 0.000000e+00 : f32
    %25 = vector.broadcast %cst : f32 to vector<16x16xf32>
    %26 = arith.select %24, %22, %25 : vector<16x16xi1>, vector<16x16xf32>
    %c0_8 = arith.constant 0 : index
    %c0_9 = arith.constant 0 : index
    %27 = vector.load %arg5[%c0_8, %c0_9] : memref<16x16xbf16, #tpu.memory_space<vmem>>, vector<16x16xbf16>
    %c16_i32_10 = arith.constant 16 : i32
    %28 = arith.muli %arg1, %c16_i32_10 : i32
    %29 = tpu.iota {dimensions = array<i32: 0>} : vector<16x16xi32>
    %30 = vector.broadcast %28 : i32 to vector<16x16xi32>
    %31 = arith.addi %30, %29 : vector<16x16xi32>
    %c16_i32_11 = arith.constant 16 : i32
    %32 = vector.broadcast %c16_i32_11 : i32 to vector<16x16xi32>
    %33 = arith.cmpi slt, %31, %32 : vector<16x16xi32>
    %cst_12 = arith.constant 0.000000e+00 : bf16
    %34 = vector.broadcast %cst_12 : bf16 to vector<16x16xbf16>
    %35 = arith.select %33, %27, %34 : vector<16x16xi1>, vector<16x16xbf16>
    %c0_13 = arith.constant 0 : index
    %c0_14 = arith.constant 0 : index
    %36 = vector.load %arg11[%c0_13, %c0_14] : memref<16x16xf32, #tpu.memory_space<vmem>>, vector<16x16xf32>
    %37 = arith.truncf %26 : vector<16x16xf32> to vector<16x16xbf16>
    %cst_15 = arith.constant dense<0.000000e+00> : vector<16x16xf32>
    %38 = tpu.matmul %37, %35, %cst_15 {dimension_numbers = #tpu.dot_dimension_numbers<[1], [0], [0], [1], [0, 0, 1, 1], [], []>} : vector<16x16xbf16>, vector<16x16xbf16>, vector<16x16xf32> -> vector<16x16xf32>
    %39 = arith.addf %36, %38 : vector<16x16xf32>
    %c0_16 = arith.constant 0 : index
    %c0_17 = arith.constant 0 : index
    %40 = vector.load %arg11[%c0_16, %c0_17] : memref<16x16xf32, #tpu.memory_space<vmem>>, vector<16x16xf32>
    tpu.vector_store %arg11[%c0_16, %c0_17], %39 {strides = array<i32>} : memref<16x16xf32, #tpu.memory_space<vmem>>, vector<16x16xf32>,
    %c0_i32_18 = arith.constant 0 : i32
    %41 = arith.cmpi eq, %arg1, %c0_i32_18 : i32
    %42 = arith.extui %41 : i1 to i32
    %c0_i32_19 = arith.constant 0 : i32
    %43 = arith.cmpi ne, %42, %c0_i32_19 : i32
    scf.if %43 {
      %c0_20 = arith.constant 0 : index
      %c0_21 = arith.constant 0 : index
      %44 = vector.load %arg11[%c0_20, %c0_21] : memref<16x16xf32, #tpu.memory_space<vmem>>, vector<16x16xf32>
      %c0_22 = arith.constant 0 : index
      %c0_23 = arith.constant 0 : index
      %45 = vector.load %arg6[%c0_22, %c0_23] : memref<16x32xf32, #tpu.memory_space<vmem>>, vector<16x32xf32>
      %cst_24 = arith.constant dense<0.000000e+00> : vector<16x32xf32>
      %46 = tpu.matmul %44, %45, %cst_24 {dimension_numbers = #tpu.dot_dimension_numbers<[1], [0], [0], [1], [0, 0, 1, 1], [], []>} : vector<16x16xf32>, vector<16x32xf32>, vector<16x32xf32> -> vector<16x32xf32>
      %c0_25 = arith.constant 0 : index
      %c0_26 = arith.constant 0 : index
      %47 = vector.load %arg7[%c0_25, %c0_26] : memref<1x32xf32, #tpu.memory_space<vmem>>, vector<1x32xf32>
      %48 = vector.broadcast %47 : vector<1x32xf32> to vector<16x32xf32>
      %49 = arith.addf %46, %48 : vector<16x32xf32>
      %cst_27 = arith.constant 0.000000e+00 : f32
      %50 = vector.broadcast %cst_27 : f32 to vector<16x32xf32>
      %51 = arith.maximumf %49, %50 : vector<16x32xf32>
      %c0_28 = arith.constant 0 : index
      %c0_29 = arith.constant 0 : index
      %52 = vector.load %arg9[%c0_28, %c0_29] : memref<16x32xf32, #tpu.memory_space<vmem>>, vector<16x32xf32>
      tpu.vector_store %arg9[%c0_28, %c0_29], %51 {strides = array<i32>} : memref<16x32xf32, #tpu.memory_space<vmem>>, vector<16x32xf32>,
      %c0_30 = arith.constant 0 : index
      %c0_31 = arith.constant 0 : index
      %53 = vector.load %arg8[%c0_30, %c0_31] : memref<1x32xf32, #tpu.memory_space<vmem>>, vector<1x32xf32>
      %54 = vector.broadcast %53 : vector<1x32xf32> to vector<16x32xf32>
      %55 = arith.mulf %51, %54 : vector<16x32xf32>
      %cst_32 = arith.constant dense<0.000000e+00> : vector<16xf32>
      %56 = vector.multi_reduction <add>, %55, %cst_32 [1] : vector<16x32xf32> to vector<16xf32>
      %57 = vector.shape_cast %56 : vector<16xf32> to vector<16x1xf32>
      %c0_33 = arith.constant 0 : index
      %c0_34 = arith.constant 0 : index
      %58 = vector.load %arg10[%c0_33, %c0_34] : memref<16x1xf32, #tpu.memory_space<vmem>>, vector<16x1xf32>
      tpu.vector_store %arg10[%c0_33, %c0_34], %57 {strides = array<i32>} : memref<16x1xf32, #tpu.memory_space<vmem>>, vector<16x1xf32>,
    } else {
    }
    return
  }
  func.func @transform_0(%arg0: i32, %arg1: i32) -> (i32, i32) {
    %c0_i32 = arith.constant 0 : i32
    return %arg0, %arg1 : i32, i32
  }
  func.func @transform_1(%arg0: i32, %arg1: i32) -> (i32, i32) {
    %c0_i32 = arith.constant 0 : i32
    %c0_i32_0 = arith.constant 0 : i32
    return %arg0, %c0_i32 : i32, i32
  }
  func.func @transform_2(%arg0: i32, %arg1: i32) -> (i32, i32) {
    %c0_i32 = arith.constant 0 : i32
    %c0_i32_0 = arith.constant 0 : i32
    return %c0_i32, %arg1 : i32, i32
  }
  func.func @transform_3(%arg0: i32, %arg1: i32) -> (i32, i32) {
    %c0_i32 = arith.constant 0 : i32
    %c0_i32_0 = arith.constant 0 : i32
    return %arg1, %c0_i32 : i32, i32
  }
  func.func @transform_4(%arg0: i32, %arg1: i32) -> (i32, i32) {
    %c0_i32 = arith.constant 0 : i32
    %c0_i32_0 = arith.constant 0 : i32
    %c0_i32_1 = arith.constant 0 : i32
    return %c0_i32, %c0_i32_0 : i32, i32
  }
  func.func @transform_5(%arg0: i32, %arg1: i32) -> (i32, i32) {
    %c0_i32 = arith.constant 0 : i32
    %c0_i32_0 = arith.constant 0 : i32
    %c0_i32_1 = arith.constant 0 : i32
    return %c0_i32, %c0_i32_0 : i32, i32
  }
  func.func @transform_6(%arg0: i32, %arg1: i32) -> (i32, i32) {
    %c0_i32 = arith.constant 0 : i32
    %c0_i32_0 = arith.constant 0 : i32
    %c0_i32_1 = arith.constant 0 : i32
    return %c0_i32, %c0_i32_0 : i32, i32
  }
  func.func @transform_7(%arg0: i32, %arg1: i32) -> (i32, i32) {
    %c0_i32 = arith.constant 0 : i32
    %c0_i32_0 = arith.constant 0 : i32
    return %arg0, %c0_i32 : i32, i32
  }
  func.func @transform_8(%arg0: i32, %arg1: i32) -> (i32, i32) {
    %c0_i32 = arith.constant 0 : i32
    %c0_i32_0 = arith.constant 0 : i32
    return %arg0, %c0_i32 : i32, i32
  }
}

module attributes {stable_mosaic.version = 11 : i64} {
  func.func @_sag_score_kernel(%arg0: i32, %arg1: i32, %arg2: memref<16x16xbf16, #tpu.memory_space<vmem>>, %arg3: memref<16x1xf32, #tpu.memory_space<vmem>>, %arg4: memref<1x16xf32, #tpu.memory_space<vmem>>, %arg5: memref<1x16xf32, #tpu.memory_space<vmem>>, %arg6: memref<1xf32, #tpu.memory_space<smem>>, %arg7: memref<16x1xf32, #tpu.memory_space<vmem>>, %arg8: memref<16x1xf32, #tpu.memory_space<vmem>>) attributes {dimension_semantics = [#tpu.dimension_semantics<parallel>, #tpu.dimension_semantics<arbitrary>], iteration_bounds = array<i64: 1, 1>, scalar_prefetch = 0 : i64, scratch_operands = 1 : i64, tpu.core_type = #tpu.core_type<tc>, window_params = [{transform_indices = @transform_0, window_bounds = array<i64: 16, 16>}, {transform_indices = @transform_1, window_bounds = array<i64: 16, 1>}, {transform_indices = @transform_2, window_bounds = array<i64: 1, 16>}, {transform_indices = @transform_3, window_bounds = array<i64: 1, 16>}, {transform_indices = @transform_4, window_bounds = array<i64: 1>}, {transform_indices = @transform_5, window_bounds = array<i64: 16, 1>}]} {
    %c0_i32 = arith.constant 0 : i32
    %0 = arith.cmpi eq, %arg1, %c0_i32 : i32
    %1 = arith.extui %0 : i1 to i32
    %c0_i32_0 = arith.constant 0 : i32
    %2 = arith.cmpi ne, %1, %c0_i32_0 : i32
    scf.if %2 {
      %cst_17 = arith.constant 0.000000e+00 : f32
      %38 = vector.broadcast %cst_17 : f32 to vector<16x1xf32>
      %c0_18 = arith.constant 0 : index
      %c0_19 = arith.constant 0 : index
      %39 = vector.load %arg8[%c0_18, %c0_19] : memref<16x1xf32, #tpu.memory_space<vmem>>, vector<16x1xf32>
      tpu.vector_store %arg8[%c0_18, %c0_19], %38 {strides = array<i32>} : memref<16x1xf32, #tpu.memory_space<vmem>>, vector<16x1xf32>,
    } else {
    }
    %c0 = arith.constant 0 : index
    %c0_1 = arith.constant 0 : index
    %3 = vector.load %arg2[%c0, %c0_1] : memref<16x16xbf16, #tpu.memory_space<vmem>>, vector<16x16xbf16>
    %4 = arith.extf %3 : vector<16x16xbf16> to vector<16x16xf32>
    %c16_i32 = arith.constant 16 : i32
    %5 = arith.muli %arg0, %c16_i32 : i32
    %6 = tpu.iota {dimensions = array<i32: 0>} : vector<16x16xi32>
    %7 = vector.broadcast %5 : i32 to vector<16x16xi32>
    %8 = arith.addi %7, %6 : vector<16x16xi32>
    %c16_i32_2 = arith.constant 16 : i32
    %9 = arith.muli %arg1, %c16_i32_2 : i32
    %10 = tpu.iota {dimensions = array<i32: 1>} : vector<16x16xi32>
    %11 = vector.broadcast %9 : i32 to vector<16x16xi32>
    %12 = arith.addi %11, %10 : vector<16x16xi32>
    %13 = arith.cmpi eq, %8, %12 : vector<16x16xi32>
    %14 = arith.extui %13 : vector<16x16xi1> to vector<16x16xi32>
    %15 = arith.sitofp %14 : vector<16x16xi32> to vector<16x16xf32>
    %16 = arith.addf %4, %15 : vector<16x16xf32>
    %c0_3 = arith.constant 0 : index
    %c0_4 = arith.constant 0 : index
    %17 = vector.load %arg3[%c0_3, %c0_4] : memref<16x1xf32, #tpu.memory_space<vmem>>, vector<16x1xf32>
    %18 = vector.broadcast %17 : vector<16x1xf32> to vector<16x16xf32>
    %19 = arith.mulf %16, %18 : vector<16x16xf32>
    %c0_5 = arith.constant 0 : index
    %c0_6 = arith.constant 0 : index
    %20 = vector.load %arg4[%c0_5, %c0_6] : memref<1x16xf32, #tpu.memory_space<vmem>>, vector<1x16xf32>
    %21 = vector.broadcast %20 : vector<1x16xf32> to vector<16x16xf32>
    %22 = arith.mulf %19, %21 : vector<16x16xf32>
    %c16_i32_7 = arith.constant 16 : i32
    %23 = vector.broadcast %c16_i32_7 : i32 to vector<16x16xi32>
    %24 = arith.cmpi slt, %12, %23 : vector<16x16xi32>
    %c0_8 = arith.constant 0 : index
    %c0_9 = arith.constant 0 : index
    %25 = vector.load %arg5[%c0_8, %c0_9] : memref<1x16xf32, #tpu.memory_space<vmem>>, vector<1x16xf32>
    %26 = vector.broadcast %25 : vector<1x16xf32> to vector<16x16xf32>
    %27 = arith.mulf %22, %26 : vector<16x16xf32>
    %cst = arith.constant 0.000000e+00 : f32
    %28 = vector.broadcast %cst : f32 to vector<16x16xf32>
    %29 = arith.select %24, %27, %28 : vector<16x16xi1>, vector<16x16xf32>
    %c0_10 = arith.constant 0 : index
    %c0_11 = arith.constant 0 : index
    %30 = vector.load %arg8[%c0_10, %c0_11] : memref<16x1xf32, #tpu.memory_space<vmem>>, vector<16x1xf32>
    %cst_12 = arith.constant dense<0.000000e+00> : vector<16xf32>
    %31 = vector.multi_reduction <add>, %29, %cst_12 [1] : vector<16x16xf32> to vector<16xf32>
    %32 = vector.shape_cast %31 : vector<16xf32> to vector<16x1xf32>
    %33 = arith.addf %30, %32 : vector<16x1xf32>
    %c0_13 = arith.constant 0 : index
    %c0_14 = arith.constant 0 : index
    %34 = vector.load %arg8[%c0_13, %c0_14] : memref<16x1xf32, #tpu.memory_space<vmem>>, vector<16x1xf32>
    tpu.vector_store %arg8[%c0_13, %c0_14], %33 {strides = array<i32>} : memref<16x1xf32, #tpu.memory_space<vmem>>, vector<16x1xf32>,
    %c0_i32_15 = arith.constant 0 : i32
    %35 = arith.cmpi eq, %arg1, %c0_i32_15 : i32
    %36 = arith.extui %35 : i1 to i32
    %c0_i32_16 = arith.constant 0 : i32
    %37 = arith.cmpi ne, %36, %c0_i32_16 : i32
    scf.if %37 {
      %c0_17 = arith.constant 0 : index
      %c0_18 = arith.constant 0 : index
      %38 = vector.load %arg8[%c0_17, %c0_18] : memref<16x1xf32, #tpu.memory_space<vmem>>, vector<16x1xf32>
      %c0_19 = arith.constant 0 : index
      %39 = memref.load %arg6[%c0_19] : memref<1xf32, #tpu.memory_space<smem>>
      %40 = vector.broadcast %39 : f32 to vector<16x1xf32>
      %41 = arith.addf %38, %40 : vector<16x1xf32>
      %c0_20 = arith.constant 0 : index
      %c0_21 = arith.constant 0 : index
      %42 = vector.load %arg7[%c0_20, %c0_21] : memref<16x1xf32, #tpu.memory_space<vmem>>, vector<16x1xf32>
      tpu.vector_store %arg7[%c0_20, %c0_21], %41 {strides = array<i32>} : memref<16x1xf32, #tpu.memory_space<vmem>>, vector<16x1xf32>,
    } else {
    }
    return
  }
  func.func @transform_0(%arg0: i32, %arg1: i32) -> (i32, i32) {
    %c0_i32 = arith.constant 0 : i32
    return %arg0, %arg1 : i32, i32
  }
  func.func @transform_1(%arg0: i32, %arg1: i32) -> (i32, i32) {
    %c0_i32 = arith.constant 0 : i32
    %c0_i32_0 = arith.constant 0 : i32
    return %arg0, %c0_i32 : i32, i32
  }
  func.func @transform_2(%arg0: i32, %arg1: i32) -> (i32, i32) {
    %c0_i32 = arith.constant 0 : i32
    %c0_i32_0 = arith.constant 0 : i32
    return %c0_i32, %arg1 : i32, i32
  }
  func.func @transform_3(%arg0: i32, %arg1: i32) -> (i32, i32) {
    %c0_i32 = arith.constant 0 : i32
    %c0_i32_0 = arith.constant 0 : i32
    return %c0_i32, %arg1 : i32, i32
  }
  func.func @transform_4(%arg0: i32, %arg1: i32) -> i32 {
    %c0_i32 = arith.constant 0 : i32
    %c0_i32_0 = arith.constant 0 : i32
    return %c0_i32 : i32
  }
  func.func @transform_5(%arg0: i32, %arg1: i32) -> (i32, i32) {
    %c0_i32 = arith.constant 0 : i32
    %c0_i32_0 = arith.constant 0 : i32
    return %arg0, %c0_i32 : i32, i32
  }
}

module attributes {stable_mosaic.version = 11 : i64} {
  func.func @_gcn_conv_kernel(%arg0: i32, %arg1: i32, %arg2: memref<13x13xbf16, #tpu.memory_space<vmem>>, %arg3: memref<13x1xf32, #tpu.memory_space<vmem>>, %arg4: memref<1x13xf32, #tpu.memory_space<vmem>>, %arg5: memref<13x32xbf16, #tpu.memory_space<vmem>>, %arg6: memref<32x32xf32, #tpu.memory_space<vmem>>, %arg7: memref<1x32xf32, #tpu.memory_space<vmem>>, %arg8: memref<1x32xf32, #tpu.memory_space<vmem>>, %arg9: memref<13x32xf32, #tpu.memory_space<vmem>>, %arg10: memref<13x1xf32, #tpu.memory_space<vmem>>, %arg11: memref<13x32xf32, #tpu.memory_space<vmem>>) attributes {dimension_semantics = [#tpu.dimension_semantics<parallel>, #tpu.dimension_semantics<arbitrary>], iteration_bounds = array<i64: 1, 1>, scalar_prefetch = 0 : i64, scratch_operands = 1 : i64, tpu.core_type = #tpu.core_type<tc>, window_params = [{transform_indices = @transform_0, window_bounds = array<i64: 13, 13>}, {transform_indices = @transform_1, window_bounds = array<i64: 13, 1>}, {transform_indices = @transform_2, window_bounds = array<i64: 1, 13>}, {transform_indices = @transform_3, window_bounds = array<i64: 13, 32>}, {pipeline_mode = #tpu.pipeline_mode<synchronous>, transform_indices = @transform_4, window_bounds = array<i64: 32, 32>}, {pipeline_mode = #tpu.pipeline_mode<synchronous>, transform_indices = @transform_5, window_bounds = array<i64: 1, 32>}, {pipeline_mode = #tpu.pipeline_mode<synchronous>, transform_indices = @transform_6, window_bounds = array<i64: 1, 32>}, {transform_indices = @transform_7, window_bounds = array<i64: 13, 32>}, {transform_indices = @transform_8, window_bounds = array<i64: 13, 1>}]} {
    %c0_i32 = arith.constant 0 : i32
    %0 = arith.cmpi eq, %arg1, %c0_i32 : i32
    %1 = arith.extui %0 : i1 to i32
    %c0_i32_0 = arith.constant 0 : i32
    %2 = arith.cmpi ne, %1, %c0_i32_0 : i32
    scf.if %2 {
      %cst_20 = arith.constant 0.000000e+00 : f32
      %44 = vector.broadcast %cst_20 : f32 to vector<13x32xf32>
      %c0_21 = arith.constant 0 : index
      %c0_22 = arith.constant 0 : index
      %45 = vector.load %arg11[%c0_21, %c0_22] : memref<13x32xf32, #tpu.memory_space<vmem>>, vector<13x32xf32>
      tpu.vector_store %arg11[%c0_21, %c0_22], %44 {strides = array<i32>} : memref<13x32xf32, #tpu.memory_space<vmem>>, vector<13x32xf32>,
    } else {
    }
    %c0 = arith.constant 0 : index
    %c0_1 = arith.constant 0 : index
    %3 = vector.load %arg2[%c0, %c0_1] : memref<13x13xbf16, #tpu.memory_space<vmem>>, vector<13x13xbf16>
    %4 = arith.extf %3 : vector<13x13xbf16> to vector<13x13xf32>
    %c13_i32 = arith.constant 13 : i32
    %5 = arith.muli %arg0, %c13_i32 : i32
    %6 = tpu.iota {dimensions = array<i32: 0>} : vector<13x13xi32>
    %7 = vector.broadcast %5 : i32 to vector<13x13xi32>
    %8 = arith.addi %7, %6 : vector<13x13xi32>
    %c13_i32_2 = arith.constant 13 : i32
    %9 = arith.muli %arg1, %c13_i32_2 : i32
    %10 = tpu.iota {dimensions = array<i32: 1>} : vector<13x13xi32>
    %11 = vector.broadcast %9 : i32 to vector<13x13xi32>
    %12 = arith.addi %11, %10 : vector<13x13xi32>
    %13 = arith.cmpi eq, %8, %12 : vector<13x13xi32>
    %14 = arith.extui %13 : vector<13x13xi1> to vector<13x13xi32>
    %15 = arith.sitofp %14 : vector<13x13xi32> to vector<13x13xf32>
    %16 = arith.addf %4, %15 : vector<13x13xf32>
    %c0_3 = arith.constant 0 : index
    %c0_4 = arith.constant 0 : index
    %17 = vector.load %arg3[%c0_3, %c0_4] : memref<13x1xf32, #tpu.memory_space<vmem>>, vector<13x1xf32>
    %18 = vector.broadcast %17 : vector<13x1xf32> to vector<13x13xf32>
    %19 = arith.mulf %16, %18 : vector<13x13xf32>
    %c0_5 = arith.constant 0 : index
    %c0_6 = arith.constant 0 : index
    %20 = vector.load %arg4[%c0_5, %c0_6] : memref<1x13xf32, #tpu.memory_space<vmem>>, vector<1x13xf32>
    %21 = vector.broadcast %20 : vector<1x13xf32> to vector<13x13xf32>
    %22 = arith.mulf %19, %21 : vector<13x13xf32>
    %c13_i32_7 = arith.constant 13 : i32
    %23 = vector.broadcast %c13_i32_7 : i32 to vector<13x13xi32>
    %24 = arith.cmpi slt, %12, %23 : vector<13x13xi32>
    %cst = arith.constant 0.000000e+00 : f32
    %25 = vector.broadcast %cst : f32 to vector<13x13xf32>
    %26 = arith.select %24, %22, %25 : vector<13x13xi1>, vector<13x13xf32>
    %c0_8 = arith.constant 0 : index
    %c0_9 = arith.constant 0 : index
    %27 = vector.load %arg5[%c0_8, %c0_9] : memref<13x32xbf16, #tpu.memory_space<vmem>>, vector<13x32xbf16>
    %c13_i32_10 = arith.constant 13 : i32
    %28 = arith.muli %arg1, %c13_i32_10 : i32
    %29 = tpu.iota {dimensions = array<i32: 0>} : vector<13x32xi32>
    %30 = vector.broadcast %28 : i32 to vector<13x32xi32>
    %31 = arith.addi %30, %29 : vector<13x32xi32>
    %c13_i32_11 = arith.constant 13 : i32
    %32 = vector.broadcast %c13_i32_11 : i32 to vector<13x32xi32>
    %33 = arith.cmpi slt, %31, %32 : vector<13x32xi32>
    %cst_12 = arith.constant 0.000000e+00 : bf16
    %34 = vector.broadcast %cst_12 : bf16 to vector<13x32xbf16>
    %35 = arith.select %33, %27, %34 : vector<13x32xi1>, vector<13x32xbf16>
    %c0_13 = arith.constant 0 : index
    %c0_14 = arith.constant 0 : index
    %36 = vector.load %arg11[%c0_13, %c0_14] : memref<13x32xf32, #tpu.memory_space<vmem>>, vector<13x32xf32>
    %37 = arith.truncf %26 : vector<13x13xf32> to vector<13x13xbf16>
    %cst_15 = arith.constant dense<0.000000e+00> : vector<13x32xf32>
    %38 = tpu.matmul %37, %35, %cst_15 {dimension_numbers = #tpu.dot_dimension_numbers<[1], [0], [0], [1], [0, 0, 1, 1], [], []>} : vector<13x13xbf16>, vector<13x32xbf16>, vector<13x32xf32> -> vector<13x32xf32>
    %39 = arith.addf %36, %38 : vector<13x32xf32>
    %c0_16 = arith.constant 0 : index
    %c0_17 = arith.constant 0 : index
    %40 = vector.load %arg11[%c0_16, %c0_17] : memref<13x32xf32, #tpu.memory_space<vmem>>, vector<13x32xf32>
    tpu.vector_store %arg11[%c0_16, %c0_17], %39 {strides = array<i32>} : memref<13x32xf32, #tpu.memory_space<vmem>>, vector<13x32xf32>,
    %c0_i32_18 = arith.constant 0 : i32
    %41 = arith.cmpi eq, %arg1, %c0_i32_18 : i32
    %42 = arith.extui %41 : i1 to i32
    %c0_i32_19 = arith.constant 0 : i32
    %43 = arith.cmpi ne, %42, %c0_i32_19 : i32
    scf.if %43 {
      %c0_20 = arith.constant 0 : index
      %c0_21 = arith.constant 0 : index
      %44 = vector.load %arg11[%c0_20, %c0_21] : memref<13x32xf32, #tpu.memory_space<vmem>>, vector<13x32xf32>
      %c0_22 = arith.constant 0 : index
      %c0_23 = arith.constant 0 : index
      %45 = vector.load %arg6[%c0_22, %c0_23] : memref<32x32xf32, #tpu.memory_space<vmem>>, vector<32x32xf32>
      %cst_24 = arith.constant dense<0.000000e+00> : vector<13x32xf32>
      %46 = tpu.matmul %44, %45, %cst_24 {dimension_numbers = #tpu.dot_dimension_numbers<[1], [0], [0], [1], [0, 0, 1, 1], [], []>} : vector<13x32xf32>, vector<32x32xf32>, vector<13x32xf32> -> vector<13x32xf32>
      %c0_25 = arith.constant 0 : index
      %c0_26 = arith.constant 0 : index
      %47 = vector.load %arg7[%c0_25, %c0_26] : memref<1x32xf32, #tpu.memory_space<vmem>>, vector<1x32xf32>
      %48 = vector.broadcast %47 : vector<1x32xf32> to vector<13x32xf32>
      %49 = arith.addf %46, %48 : vector<13x32xf32>
      %cst_27 = arith.constant 0.000000e+00 : f32
      %50 = vector.broadcast %cst_27 : f32 to vector<13x32xf32>
      %51 = arith.maximumf %49, %50 : vector<13x32xf32>
      %c0_28 = arith.constant 0 : index
      %c0_29 = arith.constant 0 : index
      %52 = vector.load %arg9[%c0_28, %c0_29] : memref<13x32xf32, #tpu.memory_space<vmem>>, vector<13x32xf32>
      tpu.vector_store %arg9[%c0_28, %c0_29], %51 {strides = array<i32>} : memref<13x32xf32, #tpu.memory_space<vmem>>, vector<13x32xf32>,
      %c0_30 = arith.constant 0 : index
      %c0_31 = arith.constant 0 : index
      %53 = vector.load %arg8[%c0_30, %c0_31] : memref<1x32xf32, #tpu.memory_space<vmem>>, vector<1x32xf32>
      %54 = vector.broadcast %53 : vector<1x32xf32> to vector<13x32xf32>
      %55 = arith.mulf %51, %54 : vector<13x32xf32>
      %cst_32 = arith.constant dense<0.000000e+00> : vector<13xf32>
      %56 = vector.multi_reduction <add>, %55, %cst_32 [1] : vector<13x32xf32> to vector<13xf32>
      %57 = vector.shape_cast %56 : vector<13xf32> to vector<13x1xf32>
      %c0_33 = arith.constant 0 : index
      %c0_34 = arith.constant 0 : index
      %58 = vector.load %arg10[%c0_33, %c0_34] : memref<13x1xf32, #tpu.memory_space<vmem>>, vector<13x1xf32>
      tpu.vector_store %arg10[%c0_33, %c0_34], %57 {strides = array<i32>} : memref<13x1xf32, #tpu.memory_space<vmem>>, vector<13x1xf32>,
    } else {
    }
    return
  }
  func.func @transform_0(%arg0: i32, %arg1: i32) -> (i32, i32) {
    %c0_i32 = arith.constant 0 : i32
    return %arg0, %arg1 : i32, i32
  }
  func.func @transform_1(%arg0: i32, %arg1: i32) -> (i32, i32) {
    %c0_i32 = arith.constant 0 : i32
    %c0_i32_0 = arith.constant 0 : i32
    return %arg0, %c0_i32 : i32, i32
  }
  func.func @transform_2(%arg0: i32, %arg1: i32) -> (i32, i32) {
    %c0_i32 = arith.constant 0 : i32
    %c0_i32_0 = arith.constant 0 : i32
    return %c0_i32, %arg1 : i32, i32
  }
  func.func @transform_3(%arg0: i32, %arg1: i32) -> (i32, i32) {
    %c0_i32 = arith.constant 0 : i32
    %c0_i32_0 = arith.constant 0 : i32
    return %arg1, %c0_i32 : i32, i32
  }
  func.func @transform_4(%arg0: i32, %arg1: i32) -> (i32, i32) {
    %c0_i32 = arith.constant 0 : i32
    %c0_i32_0 = arith.constant 0 : i32
    %c0_i32_1 = arith.constant 0 : i32
    return %c0_i32, %c0_i32_0 : i32, i32
  }
  func.func @transform_5(%arg0: i32, %arg1: i32) -> (i32, i32) {
    %c0_i32 = arith.constant 0 : i32
    %c0_i32_0 = arith.constant 0 : i32
    %c0_i32_1 = arith.constant 0 : i32
    return %c0_i32, %c0_i32_0 : i32, i32
  }
  func.func @transform_6(%arg0: i32, %arg1: i32) -> (i32, i32) {
    %c0_i32 = arith.constant 0 : i32
    %c0_i32_0 = arith.constant 0 : i32
    %c0_i32_1 = arith.constant 0 : i32
    return %c0_i32, %c0_i32_0 : i32, i32
  }
  func.func @transform_7(%arg0: i32, %arg1: i32) -> (i32, i32) {
    %c0_i32 = arith.constant 0 : i32
    %c0_i32_0 = arith.constant 0 : i32
    return %arg0, %c0_i32 : i32, i32
  }
  func.func @transform_8(%arg0: i32, %arg1: i32) -> (i32, i32) {
    %c0_i32 = arith.constant 0 : i32
    %c0_i32_0 = arith.constant 0 : i32
    return %arg0, %c0_i32 : i32, i32
  }
}

module attributes {stable_mosaic.version = 11 : i64} {
  func.func @_sag_score_kernel(%arg0: i32, %arg1: i32, %arg2: memref<13x13xbf16, #tpu.memory_space<vmem>>, %arg3: memref<13x1xf32, #tpu.memory_space<vmem>>, %arg4: memref<1x13xf32, #tpu.memory_space<vmem>>, %arg5: memref<1x13xf32, #tpu.memory_space<vmem>>, %arg6: memref<1xf32, #tpu.memory_space<smem>>, %arg7: memref<13x1xf32, #tpu.memory_space<vmem>>, %arg8: memref<13x1xf32, #tpu.memory_space<vmem>>) attributes {dimension_semantics = [#tpu.dimension_semantics<parallel>, #tpu.dimension_semantics<arbitrary>], iteration_bounds = array<i64: 1, 1>, scalar_prefetch = 0 : i64, scratch_operands = 1 : i64, tpu.core_type = #tpu.core_type<tc>, window_params = [{transform_indices = @transform_0, window_bounds = array<i64: 13, 13>}, {transform_indices = @transform_1, window_bounds = array<i64: 13, 1>}, {transform_indices = @transform_2, window_bounds = array<i64: 1, 13>}, {transform_indices = @transform_3, window_bounds = array<i64: 1, 13>}, {transform_indices = @transform_4, window_bounds = array<i64: 1>}, {transform_indices = @transform_5, window_bounds = array<i64: 13, 1>}]} {
    %c0_i32 = arith.constant 0 : i32
    %0 = arith.cmpi eq, %arg1, %c0_i32 : i32
    %1 = arith.extui %0 : i1 to i32
    %c0_i32_0 = arith.constant 0 : i32
    %2 = arith.cmpi ne, %1, %c0_i32_0 : i32
    scf.if %2 {
      %cst_17 = arith.constant 0.000000e+00 : f32
      %38 = vector.broadcast %cst_17 : f32 to vector<13x1xf32>
      %c0_18 = arith.constant 0 : index
      %c0_19 = arith.constant 0 : index
      %39 = vector.load %arg8[%c0_18, %c0_19] : memref<13x1xf32, #tpu.memory_space<vmem>>, vector<13x1xf32>
      tpu.vector_store %arg8[%c0_18, %c0_19], %38 {strides = array<i32>} : memref<13x1xf32, #tpu.memory_space<vmem>>, vector<13x1xf32>,
    } else {
    }
    %c0 = arith.constant 0 : index
    %c0_1 = arith.constant 0 : index
    %3 = vector.load %arg2[%c0, %c0_1] : memref<13x13xbf16, #tpu.memory_space<vmem>>, vector<13x13xbf16>
    %4 = arith.extf %3 : vector<13x13xbf16> to vector<13x13xf32>
    %c13_i32 = arith.constant 13 : i32
    %5 = arith.muli %arg0, %c13_i32 : i32
    %6 = tpu.iota {dimensions = array<i32: 0>} : vector<13x13xi32>
    %7 = vector.broadcast %5 : i32 to vector<13x13xi32>
    %8 = arith.addi %7, %6 : vector<13x13xi32>
    %c13_i32_2 = arith.constant 13 : i32
    %9 = arith.muli %arg1, %c13_i32_2 : i32
    %10 = tpu.iota {dimensions = array<i32: 1>} : vector<13x13xi32>
    %11 = vector.broadcast %9 : i32 to vector<13x13xi32>
    %12 = arith.addi %11, %10 : vector<13x13xi32>
    %13 = arith.cmpi eq, %8, %12 : vector<13x13xi32>
    %14 = arith.extui %13 : vector<13x13xi1> to vector<13x13xi32>
    %15 = arith.sitofp %14 : vector<13x13xi32> to vector<13x13xf32>
    %16 = arith.addf %4, %15 : vector<13x13xf32>
    %c0_3 = arith.constant 0 : index
    %c0_4 = arith.constant 0 : index
    %17 = vector.load %arg3[%c0_3, %c0_4] : memref<13x1xf32, #tpu.memory_space<vmem>>, vector<13x1xf32>
    %18 = vector.broadcast %17 : vector<13x1xf32> to vector<13x13xf32>
    %19 = arith.mulf %16, %18 : vector<13x13xf32>
    %c0_5 = arith.constant 0 : index
    %c0_6 = arith.constant 0 : index
    %20 = vector.load %arg4[%c0_5, %c0_6] : memref<1x13xf32, #tpu.memory_space<vmem>>, vector<1x13xf32>
    %21 = vector.broadcast %20 : vector<1x13xf32> to vector<13x13xf32>
    %22 = arith.mulf %19, %21 : vector<13x13xf32>
    %c13_i32_7 = arith.constant 13 : i32
    %23 = vector.broadcast %c13_i32_7 : i32 to vector<13x13xi32>
    %24 = arith.cmpi slt, %12, %23 : vector<13x13xi32>
    %c0_8 = arith.constant 0 : index
    %c0_9 = arith.constant 0 : index
    %25 = vector.load %arg5[%c0_8, %c0_9] : memref<1x13xf32, #tpu.memory_space<vmem>>, vector<1x13xf32>
    %26 = vector.broadcast %25 : vector<1x13xf32> to vector<13x13xf32>
    %27 = arith.mulf %22, %26 : vector<13x13xf32>
    %cst = arith.constant 0.000000e+00 : f32
    %28 = vector.broadcast %cst : f32 to vector<13x13xf32>
    %29 = arith.select %24, %27, %28 : vector<13x13xi1>, vector<13x13xf32>
    %c0_10 = arith.constant 0 : index
    %c0_11 = arith.constant 0 : index
    %30 = vector.load %arg8[%c0_10, %c0_11] : memref<13x1xf32, #tpu.memory_space<vmem>>, vector<13x1xf32>
    %cst_12 = arith.constant dense<0.000000e+00> : vector<13xf32>
    %31 = vector.multi_reduction <add>, %29, %cst_12 [1] : vector<13x13xf32> to vector<13xf32>
    %32 = vector.shape_cast %31 : vector<13xf32> to vector<13x1xf32>
    %33 = arith.addf %30, %32 : vector<13x1xf32>
    %c0_13 = arith.constant 0 : index
    %c0_14 = arith.constant 0 : index
    %34 = vector.load %arg8[%c0_13, %c0_14] : memref<13x1xf32, #tpu.memory_space<vmem>>, vector<13x1xf32>
    tpu.vector_store %arg8[%c0_13, %c0_14], %33 {strides = array<i32>} : memref<13x1xf32, #tpu.memory_space<vmem>>, vector<13x1xf32>,
    %c0_i32_15 = arith.constant 0 : i32
    %35 = arith.cmpi eq, %arg1, %c0_i32_15 : i32
    %36 = arith.extui %35 : i1 to i32
    %c0_i32_16 = arith.constant 0 : i32
    %37 = arith.cmpi ne, %36, %c0_i32_16 : i32
    scf.if %37 {
      %c0_17 = arith.constant 0 : index
      %c0_18 = arith.constant 0 : index
      %38 = vector.load %arg8[%c0_17, %c0_18] : memref<13x1xf32, #tpu.memory_space<vmem>>, vector<13x1xf32>
      %c0_19 = arith.constant 0 : index
      %39 = memref.load %arg6[%c0_19] : memref<1xf32, #tpu.memory_space<smem>>
      %40 = vector.broadcast %39 : f32 to vector<13x1xf32>
      %41 = arith.addf %38, %40 : vector<13x1xf32>
      %c0_20 = arith.constant 0 : index
      %c0_21 = arith.constant 0 : index
      %42 = vector.load %arg7[%c0_20, %c0_21] : memref<13x1xf32, #tpu.memory_space<vmem>>, vector<13x1xf32>
      tpu.vector_store %arg7[%c0_20, %c0_21], %41 {strides = array<i32>} : memref<13x1xf32, #tpu.memory_space<vmem>>, vector<13x1xf32>,
    } else {
    }
    return
  }
  func.func @transform_0(%arg0: i32, %arg1: i32) -> (i32, i32) {
    %c0_i32 = arith.constant 0 : i32
    return %arg0, %arg1 : i32, i32
  }
  func.func @transform_1(%arg0: i32, %arg1: i32) -> (i32, i32) {
    %c0_i32 = arith.constant 0 : i32
    %c0_i32_0 = arith.constant 0 : i32
    return %arg0, %c0_i32 : i32, i32
  }
  func.func @transform_2(%arg0: i32, %arg1: i32) -> (i32, i32) {
    %c0_i32 = arith.constant 0 : i32
    %c0_i32_0 = arith.constant 0 : i32
    return %c0_i32, %arg1 : i32, i32
  }
  func.func @transform_3(%arg0: i32, %arg1: i32) -> (i32, i32) {
    %c0_i32 = arith.constant 0 : i32
    %c0_i32_0 = arith.constant 0 : i32
    return %c0_i32, %arg1 : i32, i32
  }
  func.func @transform_4(%arg0: i32, %arg1: i32) -> i32 {
    %c0_i32 = arith.constant 0 : i32
    %c0_i32_0 = arith.constant 0 : i32
    return %c0_i32 : i32
  }
  func.func @transform_5(%arg0: i32, %arg1: i32) -> (i32, i32) {
    %c0_i32 = arith.constant 0 : i32
    %c0_i32_0 = arith.constant 0 : i32
    return %arg0, %c0_i32 : i32, i32
  }
}

module attributes {stable_mosaic.version = 11 : i64} {
  func.func @_gcn_conv_kernel(%arg0: i32, %arg1: i32, %arg2: memref<11x11xbf16, #tpu.memory_space<vmem>>, %arg3: memref<11x1xf32, #tpu.memory_space<vmem>>, %arg4: memref<1x11xf32, #tpu.memory_space<vmem>>, %arg5: memref<11x32xbf16, #tpu.memory_space<vmem>>, %arg6: memref<32x32xf32, #tpu.memory_space<vmem>>, %arg7: memref<1x32xf32, #tpu.memory_space<vmem>>, %arg8: memref<1x32xf32, #tpu.memory_space<vmem>>, %arg9: memref<11x32xf32, #tpu.memory_space<vmem>>, %arg10: memref<11x1xf32, #tpu.memory_space<vmem>>, %arg11: memref<11x32xf32, #tpu.memory_space<vmem>>) attributes {dimension_semantics = [#tpu.dimension_semantics<parallel>, #tpu.dimension_semantics<arbitrary>], iteration_bounds = array<i64: 1, 1>, scalar_prefetch = 0 : i64, scratch_operands = 1 : i64, tpu.core_type = #tpu.core_type<tc>, window_params = [{transform_indices = @transform_0, window_bounds = array<i64: 11, 11>}, {transform_indices = @transform_1, window_bounds = array<i64: 11, 1>}, {transform_indices = @transform_2, window_bounds = array<i64: 1, 11>}, {transform_indices = @transform_3, window_bounds = array<i64: 11, 32>}, {pipeline_mode = #tpu.pipeline_mode<synchronous>, transform_indices = @transform_4, window_bounds = array<i64: 32, 32>}, {pipeline_mode = #tpu.pipeline_mode<synchronous>, transform_indices = @transform_5, window_bounds = array<i64: 1, 32>}, {pipeline_mode = #tpu.pipeline_mode<synchronous>, transform_indices = @transform_6, window_bounds = array<i64: 1, 32>}, {transform_indices = @transform_7, window_bounds = array<i64: 11, 32>}, {transform_indices = @transform_8, window_bounds = array<i64: 11, 1>}]} {
    %c0_i32 = arith.constant 0 : i32
    %0 = arith.cmpi eq, %arg1, %c0_i32 : i32
    %1 = arith.extui %0 : i1 to i32
    %c0_i32_0 = arith.constant 0 : i32
    %2 = arith.cmpi ne, %1, %c0_i32_0 : i32
    scf.if %2 {
      %cst_20 = arith.constant 0.000000e+00 : f32
      %44 = vector.broadcast %cst_20 : f32 to vector<11x32xf32>
      %c0_21 = arith.constant 0 : index
      %c0_22 = arith.constant 0 : index
      %45 = vector.load %arg11[%c0_21, %c0_22] : memref<11x32xf32, #tpu.memory_space<vmem>>, vector<11x32xf32>
      tpu.vector_store %arg11[%c0_21, %c0_22], %44 {strides = array<i32>} : memref<11x32xf32, #tpu.memory_space<vmem>>, vector<11x32xf32>,
    } else {
    }
    %c0 = arith.constant 0 : index
    %c0_1 = arith.constant 0 : index
    %3 = vector.load %arg2[%c0, %c0_1] : memref<11x11xbf16, #tpu.memory_space<vmem>>, vector<11x11xbf16>
    %4 = arith.extf %3 : vector<11x11xbf16> to vector<11x11xf32>
    %c11_i32 = arith.constant 11 : i32
    %5 = arith.muli %arg0, %c11_i32 : i32
    %6 = tpu.iota {dimensions = array<i32: 0>} : vector<11x11xi32>
    %7 = vector.broadcast %5 : i32 to vector<11x11xi32>
    %8 = arith.addi %7, %6 : vector<11x11xi32>
    %c11_i32_2 = arith.constant 11 : i32
    %9 = arith.muli %arg1, %c11_i32_2 : i32
    %10 = tpu.iota {dimensions = array<i32: 1>} : vector<11x11xi32>
    %11 = vector.broadcast %9 : i32 to vector<11x11xi32>
    %12 = arith.addi %11, %10 : vector<11x11xi32>
    %13 = arith.cmpi eq, %8, %12 : vector<11x11xi32>
    %14 = arith.extui %13 : vector<11x11xi1> to vector<11x11xi32>
    %15 = arith.sitofp %14 : vector<11x11xi32> to vector<11x11xf32>
    %16 = arith.addf %4, %15 : vector<11x11xf32>
    %c0_3 = arith.constant 0 : index
    %c0_4 = arith.constant 0 : index
    %17 = vector.load %arg3[%c0_3, %c0_4] : memref<11x1xf32, #tpu.memory_space<vmem>>, vector<11x1xf32>
    %18 = vector.broadcast %17 : vector<11x1xf32> to vector<11x11xf32>
    %19 = arith.mulf %16, %18 : vector<11x11xf32>
    %c0_5 = arith.constant 0 : index
    %c0_6 = arith.constant 0 : index
    %20 = vector.load %arg4[%c0_5, %c0_6] : memref<1x11xf32, #tpu.memory_space<vmem>>, vector<1x11xf32>
    %21 = vector.broadcast %20 : vector<1x11xf32> to vector<11x11xf32>
    %22 = arith.mulf %19, %21 : vector<11x11xf32>
    %c11_i32_7 = arith.constant 11 : i32
    %23 = vector.broadcast %c11_i32_7 : i32 to vector<11x11xi32>
    %24 = arith.cmpi slt, %12, %23 : vector<11x11xi32>
    %cst = arith.constant 0.000000e+00 : f32
    %25 = vector.broadcast %cst : f32 to vector<11x11xf32>
    %26 = arith.select %24, %22, %25 : vector<11x11xi1>, vector<11x11xf32>
    %c0_8 = arith.constant 0 : index
    %c0_9 = arith.constant 0 : index
    %27 = vector.load %arg5[%c0_8, %c0_9] : memref<11x32xbf16, #tpu.memory_space<vmem>>, vector<11x32xbf16>
    %c11_i32_10 = arith.constant 11 : i32
    %28 = arith.muli %arg1, %c11_i32_10 : i32
    %29 = tpu.iota {dimensions = array<i32: 0>} : vector<11x32xi32>
    %30 = vector.broadcast %28 : i32 to vector<11x32xi32>
    %31 = arith.addi %30, %29 : vector<11x32xi32>
    %c11_i32_11 = arith.constant 11 : i32
    %32 = vector.broadcast %c11_i32_11 : i32 to vector<11x32xi32>
    %33 = arith.cmpi slt, %31, %32 : vector<11x32xi32>
    %cst_12 = arith.constant 0.000000e+00 : bf16
    %34 = vector.broadcast %cst_12 : bf16 to vector<11x32xbf16>
    %35 = arith.select %33, %27, %34 : vector<11x32xi1>, vector<11x32xbf16>
    %c0_13 = arith.constant 0 : index
    %c0_14 = arith.constant 0 : index
    %36 = vector.load %arg11[%c0_13, %c0_14] : memref<11x32xf32, #tpu.memory_space<vmem>>, vector<11x32xf32>
    %37 = arith.truncf %26 : vector<11x11xf32> to vector<11x11xbf16>
    %cst_15 = arith.constant dense<0.000000e+00> : vector<11x32xf32>
    %38 = tpu.matmul %37, %35, %cst_15 {dimension_numbers = #tpu.dot_dimension_numbers<[1], [0], [0], [1], [0, 0, 1, 1], [], []>} : vector<11x11xbf16>, vector<11x32xbf16>, vector<11x32xf32> -> vector<11x32xf32>
    %39 = arith.addf %36, %38 : vector<11x32xf32>
    %c0_16 = arith.constant 0 : index
    %c0_17 = arith.constant 0 : index
    %40 = vector.load %arg11[%c0_16, %c0_17] : memref<11x32xf32, #tpu.memory_space<vmem>>, vector<11x32xf32>
    tpu.vector_store %arg11[%c0_16, %c0_17], %39 {strides = array<i32>} : memref<11x32xf32, #tpu.memory_space<vmem>>, vector<11x32xf32>,
    %c0_i32_18 = arith.constant 0 : i32
    %41 = arith.cmpi eq, %arg1, %c0_i32_18 : i32
    %42 = arith.extui %41 : i1 to i32
    %c0_i32_19 = arith.constant 0 : i32
    %43 = arith.cmpi ne, %42, %c0_i32_19 : i32
    scf.if %43 {
      %c0_20 = arith.constant 0 : index
      %c0_21 = arith.constant 0 : index
      %44 = vector.load %arg11[%c0_20, %c0_21] : memref<11x32xf32, #tpu.memory_space<vmem>>, vector<11x32xf32>
      %c0_22 = arith.constant 0 : index
      %c0_23 = arith.constant 0 : index
      %45 = vector.load %arg6[%c0_22, %c0_23] : memref<32x32xf32, #tpu.memory_space<vmem>>, vector<32x32xf32>
      %cst_24 = arith.constant dense<0.000000e+00> : vector<11x32xf32>
      %46 = tpu.matmul %44, %45, %cst_24 {dimension_numbers = #tpu.dot_dimension_numbers<[1], [0], [0], [1], [0, 0, 1, 1], [], []>} : vector<11x32xf32>, vector<32x32xf32>, vector<11x32xf32> -> vector<11x32xf32>
      %c0_25 = arith.constant 0 : index
      %c0_26 = arith.constant 0 : index
      %47 = vector.load %arg7[%c0_25, %c0_26] : memref<1x32xf32, #tpu.memory_space<vmem>>, vector<1x32xf32>
      %48 = vector.broadcast %47 : vector<1x32xf32> to vector<11x32xf32>
      %49 = arith.addf %46, %48 : vector<11x32xf32>
      %cst_27 = arith.constant 0.000000e+00 : f32
      %50 = vector.broadcast %cst_27 : f32 to vector<11x32xf32>
      %51 = arith.maximumf %49, %50 : vector<11x32xf32>
      %c0_28 = arith.constant 0 : index
      %c0_29 = arith.constant 0 : index
      %52 = vector.load %arg9[%c0_28, %c0_29] : memref<11x32xf32, #tpu.memory_space<vmem>>, vector<11x32xf32>
      tpu.vector_store %arg9[%c0_28, %c0_29], %51 {strides = array<i32>} : memref<11x32xf32, #tpu.memory_space<vmem>>, vector<11x32xf32>,
      %c0_30 = arith.constant 0 : index
      %c0_31 = arith.constant 0 : index
      %53 = vector.load %arg8[%c0_30, %c0_31] : memref<1x32xf32, #tpu.memory_space<vmem>>, vector<1x32xf32>
      %54 = vector.broadcast %53 : vector<1x32xf32> to vector<11x32xf32>
      %55 = arith.mulf %51, %54 : vector<11x32xf32>
      %cst_32 = arith.constant dense<0.000000e+00> : vector<11xf32>
      %56 = vector.multi_reduction <add>, %55, %cst_32 [1] : vector<11x32xf32> to vector<11xf32>
      %57 = vector.shape_cast %56 : vector<11xf32> to vector<11x1xf32>
      %c0_33 = arith.constant 0 : index
      %c0_34 = arith.constant 0 : index
      %58 = vector.load %arg10[%c0_33, %c0_34] : memref<11x1xf32, #tpu.memory_space<vmem>>, vector<11x1xf32>
      tpu.vector_store %arg10[%c0_33, %c0_34], %57 {strides = array<i32>} : memref<11x1xf32, #tpu.memory_space<vmem>>, vector<11x1xf32>,
    } else {
    }
    return
  }
  func.func @transform_0(%arg0: i32, %arg1: i32) -> (i32, i32) {
    %c0_i32 = arith.constant 0 : i32
    return %arg0, %arg1 : i32, i32
  }
  func.func @transform_1(%arg0: i32, %arg1: i32) -> (i32, i32) {
    %c0_i32 = arith.constant 0 : i32
    %c0_i32_0 = arith.constant 0 : i32
    return %arg0, %c0_i32 : i32, i32
  }
  func.func @transform_2(%arg0: i32, %arg1: i32) -> (i32, i32) {
    %c0_i32 = arith.constant 0 : i32
    %c0_i32_0 = arith.constant 0 : i32
    return %c0_i32, %arg1 : i32, i32
  }
  func.func @transform_3(%arg0: i32, %arg1: i32) -> (i32, i32) {
    %c0_i32 = arith.constant 0 : i32
    %c0_i32_0 = arith.constant 0 : i32
    return %arg1, %c0_i32 : i32, i32
  }
  func.func @transform_4(%arg0: i32, %arg1: i32) -> (i32, i32) {
    %c0_i32 = arith.constant 0 : i32
    %c0_i32_0 = arith.constant 0 : i32
    %c0_i32_1 = arith.constant 0 : i32
    return %c0_i32, %c0_i32_0 : i32, i32
  }
  func.func @transform_5(%arg0: i32, %arg1: i32) -> (i32, i32) {
    %c0_i32 = arith.constant 0 : i32
    %c0_i32_0 = arith.constant 0 : i32
    %c0_i32_1 = arith.constant 0 : i32
    return %c0_i32, %c0_i32_0 : i32, i32
  }
  func.func @transform_6(%arg0: i32, %arg1: i32) -> (i32, i32) {
    %c0_i32 = arith.constant 0 : i32
    %c0_i32_0 = arith.constant 0 : i32
    %c0_i32_1 = arith.constant 0 : i32
    return %c0_i32, %c0_i32_0 : i32, i32
  }
  func.func @transform_7(%arg0: i32, %arg1: i32) -> (i32, i32) {
    %c0_i32 = arith.constant 0 : i32
    %c0_i32_0 = arith.constant 0 : i32
    return %arg0, %c0_i32 : i32, i32
  }
  func.func @transform_8(%arg0: i32, %arg1: i32) -> (i32, i32) {
    %c0_i32 = arith.constant 0 : i32
    %c0_i32_0 = arith.constant 0 : i32
    return %arg0, %c0_i32 : i32, i32
  }
}

module attributes {stable_mosaic.version = 11 : i64} {
  func.func @_sag_score_kernel(%arg0: i32, %arg1: i32, %arg2: memref<11x11xbf16, #tpu.memory_space<vmem>>, %arg3: memref<11x1xf32, #tpu.memory_space<vmem>>, %arg4: memref<1x11xf32, #tpu.memory_space<vmem>>, %arg5: memref<1x11xf32, #tpu.memory_space<vmem>>, %arg6: memref<1xf32, #tpu.memory_space<smem>>, %arg7: memref<11x1xf32, #tpu.memory_space<vmem>>, %arg8: memref<11x1xf32, #tpu.memory_space<vmem>>) attributes {dimension_semantics = [#tpu.dimension_semantics<parallel>, #tpu.dimension_semantics<arbitrary>], iteration_bounds = array<i64: 1, 1>, scalar_prefetch = 0 : i64, scratch_operands = 1 : i64, tpu.core_type = #tpu.core_type<tc>, window_params = [{transform_indices = @transform_0, window_bounds = array<i64: 11, 11>}, {transform_indices = @transform_1, window_bounds = array<i64: 11, 1>}, {transform_indices = @transform_2, window_bounds = array<i64: 1, 11>}, {transform_indices = @transform_3, window_bounds = array<i64: 1, 11>}, {transform_indices = @transform_4, window_bounds = array<i64: 1>}, {transform_indices = @transform_5, window_bounds = array<i64: 11, 1>}]} {
    %c0_i32 = arith.constant 0 : i32
    %0 = arith.cmpi eq, %arg1, %c0_i32 : i32
    %1 = arith.extui %0 : i1 to i32
    %c0_i32_0 = arith.constant 0 : i32
    %2 = arith.cmpi ne, %1, %c0_i32_0 : i32
    scf.if %2 {
      %cst_17 = arith.constant 0.000000e+00 : f32
      %38 = vector.broadcast %cst_17 : f32 to vector<11x1xf32>
      %c0_18 = arith.constant 0 : index
      %c0_19 = arith.constant 0 : index
      %39 = vector.load %arg8[%c0_18, %c0_19] : memref<11x1xf32, #tpu.memory_space<vmem>>, vector<11x1xf32>
      tpu.vector_store %arg8[%c0_18, %c0_19], %38 {strides = array<i32>} : memref<11x1xf32, #tpu.memory_space<vmem>>, vector<11x1xf32>,
    } else {
    }
    %c0 = arith.constant 0 : index
    %c0_1 = arith.constant 0 : index
    %3 = vector.load %arg2[%c0, %c0_1] : memref<11x11xbf16, #tpu.memory_space<vmem>>, vector<11x11xbf16>
    %4 = arith.extf %3 : vector<11x11xbf16> to vector<11x11xf32>
    %c11_i32 = arith.constant 11 : i32
    %5 = arith.muli %arg0, %c11_i32 : i32
    %6 = tpu.iota {dimensions = array<i32: 0>} : vector<11x11xi32>
    %7 = vector.broadcast %5 : i32 to vector<11x11xi32>
    %8 = arith.addi %7, %6 : vector<11x11xi32>
    %c11_i32_2 = arith.constant 11 : i32
    %9 = arith.muli %arg1, %c11_i32_2 : i32
    %10 = tpu.iota {dimensions = array<i32: 1>} : vector<11x11xi32>
    %11 = vector.broadcast %9 : i32 to vector<11x11xi32>
    %12 = arith.addi %11, %10 : vector<11x11xi32>
    %13 = arith.cmpi eq, %8, %12 : vector<11x11xi32>
    %14 = arith.extui %13 : vector<11x11xi1> to vector<11x11xi32>
    %15 = arith.sitofp %14 : vector<11x11xi32> to vector<11x11xf32>
    %16 = arith.addf %4, %15 : vector<11x11xf32>
    %c0_3 = arith.constant 0 : index
    %c0_4 = arith.constant 0 : index
    %17 = vector.load %arg3[%c0_3, %c0_4] : memref<11x1xf32, #tpu.memory_space<vmem>>, vector<11x1xf32>
    %18 = vector.broadcast %17 : vector<11x1xf32> to vector<11x11xf32>
    %19 = arith.mulf %16, %18 : vector<11x11xf32>
    %c0_5 = arith.constant 0 : index
    %c0_6 = arith.constant 0 : index
    %20 = vector.load %arg4[%c0_5, %c0_6] : memref<1x11xf32, #tpu.memory_space<vmem>>, vector<1x11xf32>
    %21 = vector.broadcast %20 : vector<1x11xf32> to vector<11x11xf32>
    %22 = arith.mulf %19, %21 : vector<11x11xf32>
    %c11_i32_7 = arith.constant 11 : i32
    %23 = vector.broadcast %c11_i32_7 : i32 to vector<11x11xi32>
    %24 = arith.cmpi slt, %12, %23 : vector<11x11xi32>
    %c0_8 = arith.constant 0 : index
    %c0_9 = arith.constant 0 : index
    %25 = vector.load %arg5[%c0_8, %c0_9] : memref<1x11xf32, #tpu.memory_space<vmem>>, vector<1x11xf32>
    %26 = vector.broadcast %25 : vector<1x11xf32> to vector<11x11xf32>
    %27 = arith.mulf %22, %26 : vector<11x11xf32>
    %cst = arith.constant 0.000000e+00 : f32
    %28 = vector.broadcast %cst : f32 to vector<11x11xf32>
    %29 = arith.select %24, %27, %28 : vector<11x11xi1>, vector<11x11xf32>
    %c0_10 = arith.constant 0 : index
    %c0_11 = arith.constant 0 : index
    %30 = vector.load %arg8[%c0_10, %c0_11] : memref<11x1xf32, #tpu.memory_space<vmem>>, vector<11x1xf32>
    %cst_12 = arith.constant dense<0.000000e+00> : vector<11xf32>
    %31 = vector.multi_reduction <add>, %29, %cst_12 [1] : vector<11x11xf32> to vector<11xf32>
    %32 = vector.shape_cast %31 : vector<11xf32> to vector<11x1xf32>
    %33 = arith.addf %30, %32 : vector<11x1xf32>
    %c0_13 = arith.constant 0 : index
    %c0_14 = arith.constant 0 : index
    %34 = vector.load %arg8[%c0_13, %c0_14] : memref<11x1xf32, #tpu.memory_space<vmem>>, vector<11x1xf32>
    tpu.vector_store %arg8[%c0_13, %c0_14], %33 {strides = array<i32>} : memref<11x1xf32, #tpu.memory_space<vmem>>, vector<11x1xf32>,
    %c0_i32_15 = arith.constant 0 : i32
    %35 = arith.cmpi eq, %arg1, %c0_i32_15 : i32
    %36 = arith.extui %35 : i1 to i32
    %c0_i32_16 = arith.constant 0 : i32
    %37 = arith.cmpi ne, %36, %c0_i32_16 : i32
    scf.if %37 {
      %c0_17 = arith.constant 0 : index
      %c0_18 = arith.constant 0 : index
      %38 = vector.load %arg8[%c0_17, %c0_18] : memref<11x1xf32, #tpu.memory_space<vmem>>, vector<11x1xf32>
      %c0_19 = arith.constant 0 : index
      %39 = memref.load %arg6[%c0_19] : memref<1xf32, #tpu.memory_space<smem>>
      %40 = vector.broadcast %39 : f32 to vector<11x1xf32>
      %41 = arith.addf %38, %40 : vector<11x1xf32>
      %c0_20 = arith.constant 0 : index
      %c0_21 = arith.constant 0 : index
      %42 = vector.load %arg7[%c0_20, %c0_21] : memref<11x1xf32, #tpu.memory_space<vmem>>, vector<11x1xf32>
      tpu.vector_store %arg7[%c0_20, %c0_21], %41 {strides = array<i32>} : memref<11x1xf32, #tpu.memory_space<vmem>>, vector<11x1xf32>,
    } else {
    }
    return
  }
  func.func @transform_0(%arg0: i32, %arg1: i32) -> (i32, i32) {
    %c0_i32 = arith.constant 0 : i32
    return %arg0, %arg1 : i32, i32
  }
  func.func @transform_1(%arg0: i32, %arg1: i32) -> (i32, i32) {
    %c0_i32 = arith.constant 0 : i32
    %c0_i32_0 = arith.constant 0 : i32
    return %arg0, %c0_i32 : i32, i32
  }
  func.func @transform_2(%arg0: i32, %arg1: i32) -> (i32, i32) {
    %c0_i32 = arith.constant 0 : i32
    %c0_i32_0 = arith.constant 0 : i32
    return %c0_i32, %arg1 : i32, i32
  }
  func.func @transform_3(%arg0: i32, %arg1: i32) -> (i32, i32) {
    %c0_i32 = arith.constant 0 : i32
    %c0_i32_0 = arith.constant 0 : i32
    return %c0_i32, %arg1 : i32, i32
  }
  func.func @transform_4(%arg0: i32, %arg1: i32) -> i32 {
    %c0_i32 = arith.constant 0 : i32
    %c0_i32_0 = arith.constant 0 : i32
    return %c0_i32 : i32
  }
  func.func @transform_5(%arg0: i32, %arg1: i32) -> (i32, i32) {
    %c0_i32 = arith.constant 0 : i32
    %c0_i32_0 = arith.constant 0 : i32
    return %arg0, %c0_i32 : i32, i32
  }
}

</mosaic_0001>

<bundles_post_ra>
// kernel: sagnet_forward.7
= control target key start
LH: loop header
LB: loop body
LE: loop exit
PB: predicated region body
PF: predicated region fallthrough
CT: control target
= control target key end

     0   :  { %v127_v0 = vmov 0   ;;  %vm25_vm0 = vcmask 7168   ;;  %v128_v3 = vmov 0.0   ;;  %v33_v4 = vlaneseq  ;;  %s189_s1 = inlined_call_operand.vmem [shape: f32[16,1], index: 1, kind: input, shape index: {}]   ;;  %s190_s0 = inlined_call_operand.vmem [shape: bf16[16,16], index: 0, kind: input, shape index: {}]   ;;  %s191_s2 = inlined_call_operand.vmem [shape: f32[1,16], index: 2, kind: input, shape index: {}]   ;;  %s192_s3 = inlined_call_operand.vmem [shape: f32[1,16], index: 3, kind: input, shape index: {}]   ;;  %s193_s4 = inlined_call_operand.<no memory space> [shape: f32[1], index: 4, kind: input, shape index: {}]   ;;  %s194_s5 = inlined_call_operand.vmem [shape: f32[16,1], index: 5, kind: output, shape index: {}]  }
   0x1   :  { %126 = vset.pattern.permute.xlu0 %v127_v0  ;;  %v52_v1 = vld [vmem:[%s189_s1] sm:$0xff]  ;;  %v53_v2 = vld [vmem:[%s189_s1 + $0x8] sm:$0xff]  ;;  %26 = vst.msk [vmem:[#allocation2] sm:$0xff] %vm25_vm0, %v128_v3  ;;  %27 = vst.msk [vmem:[#allocation2 + $0x8] sm:$0xff] %vm25_vm0, %v128_v3  ;;  %vm89_vm4 = vcmask 130048   ;;  %v107_v35 = vstv %s193_s4 }
   0x2   :  { %56 = vperm.xlu0 %126, %v52_v1   ;;  %v34_v5 = vshrl.u32 %v33_v4, 7  ;;  %v41_v6 = vand.u32 127, %v33_v4  ;;  %v121_v7 = vld [vmem:[%s190_s0] sm:$0xff]  }
   0x3   :  { %v122_v9 = vunpack.c.l.bf16 %v121_v7  ;;  %v123_v12 = vunpack.c.h.bf16 %v121_v7  ;;  %v118_v14 = vld [vmem:[%s191_s2] ss:$0 sm:$0xff] }
   0x4   :  { %vm44_vm1 = vcmp.eq.s32.totalorder %v34_v5, %v41_v6  ;;  %v35_v8 = vadd.s32 8, %v34_v5  ;;  %v119_v18 = vld [vmem:[%s192_s3] ss:$0 sm:$0xff]  ;;  %vm75_vm3 = vcmp.lt.s32.totalorder %v41_v6, 16 }
   0x5   :  { %v116_v10 = vsel %vm44_vm1, 1.0, %v128_v3 }
   0x6   :  { %61 = vperm.xlu0 %126, %v53_v2   ;;  %vm45_vm2 = vcmp.eq.s32.totalorder %v35_v8, %v41_v6  ;;  %v50_v11 = vadd.f32 %v122_v9, %v116_v10 }
   0x7   :  { %v117_v13 = vsel %vm45_vm2, 1.0, %v128_v3 }
   0x8   :  { %v51_v17 = vadd.f32 %v123_v12, %v117_v13  ;;  %v87_v29 = vld [vmem:[#allocation2] sm:$0xff]  ;;  %v88_v32 = vld [vmem:[#allocation2 + $0x8] sm:$0xff] }
  0x81   :  { %v57_v15 = vpop.permute.xlu0 %56 }
  0x82   :  { %v64_v16 = vmul.f32 %v57_v15, %v50_v11 }
  0x84   :  { %v73_v19 = vmul.f32 %v118_v14, %v64_v16 }
  0x85   :  { %v62_v20 = vpop.permute.xlu0 %61 }
  0x86   :  { %v65_v21 = vmul.f32 %v62_v20, %v51_v17  ;;  %v83_v22 = vmul.f32 %v119_v18, %v73_v19 }
  0x88   :  { %v74_v23 = vmul.f32 %v118_v14, %v65_v21  ;;  %v85_v24 = vsel %vm75_vm3, %v83_v22, 0.0 }
  0x89   :  { %v90_v25 = vsel %vm89_vm4, %v85_v24, 0.0 }
  0x8a   :  { %91 = vadd.xlane.f32.xlu1 %v90_v25  ;;  %v84_v26 = vmul.f32 %v119_v18, %v74_v23 }
  0x8c   :  { %v86_v27 = vsel %vm75_vm3, %v84_v26, 0.0 }
  0x8d   :  { %v93_v28 = vsel %vm89_vm4, %v86_v27, 0.0 }
  0x8e   :  { %94 = vadd.xlane.f32.xlu1 %v93_v28 }
 0x117   :  { %v92_v30 = vpop.xlane.xlu1 %91 }
 0x118   :  { %v96_v31 = vadd.f32 %v92_v30, %v87_v29 }
 0x11a   :  { %99 = vst.msk [vmem:[#allocation2] sm:$0xff] %vm25_vm0, %v96_v31 }
 0x11b   :  { %v95_v33 = vpop.xlane.xlu1 %94 }
 0x11c   :  { %v97_v34 = vadd.f32 %v95_v33, %v88_v32 }
 0x11e   :  { %100 = vst.msk [vmem:[#allocation2 + $0x8] sm:$0xff] %vm25_vm0, %v97_v34 }
 0x121   :  { %v104_v36 = vld [vmem:[#allocation2] sm:$0xff] }
 0x122   :  { %v108_v37 = vadd.f32 %v107_v35, %v104_v36 }
 0x124   :  { %110 = vst.msk [vmem:[%s194_s5] sm:$0xff] %vm25_vm0, %v108_v37 }
 0x125   :  { %v105_v38 = vld [vmem:[#allocation2 + $0x8] sm:$0xff] }
 0x126   :  { %v109_v39 = vadd.f32 %v107_v35, %v105_v38 }
 0x128   :  { %111 = vst.msk [vmem:[%s194_s5 + $0x8] sm:$0xff] %vm25_vm0, %v109_v39 }

// kernel: sagnet_forward.6
= control target key start
LH: loop header
LB: loop body
LE: loop exit
PB: predicated region body
PF: predicated region fallthrough
CT: control target
= control target key end

     0   :  { %v321_v0 = vmov 0   ;;  %v322_v2 = vmov 0.0   ;;  %vm323_vm0 = vmmov 1   ;;  %vm33_vm2 = vcmask 130048   ;;  %s419_s1 = inlined_call_operand.vmem [shape: f32[16,1], index: 1, kind: input, shape index: {}]   ;;  %s420_s3 = inlined_call_operand.vmem [shape: bf16[16,16], index: 3, kind: input, shape index: {}]   ;;  %s421_s0 = inlined_call_operand.vmem [shape: bf16[16,16], index: 0, kind: input, shape index: {}]   ;;  %s422_s2 = inlined_call_operand.vmem [shape: f32[1,16], index: 2, kind: input, shape index: {}]   ;;  %s423_s4 = inlined_call_operand.vmem [shape: f32[16,32], index: 4, kind: input, shape index: {}]   ;;  %s424_s5 = inlined_call_operand.vmem [shape: f32[1,32], index: 5, kind: input, shape index: {}]   ;;  %s425_s6 = inlined_call_operand.vmem [shape: f32[1,32], index: 6, kind: input, shape index: {}]   ;;  %s426_s7 = inlined_call_operand.vmem [shape: f32[16,32], index: 7, kind: output, shape index: {0}]   ;;  %s427_s8 = inlined_call_operand.vmem [shape: f32[16,1], index: 8, kind: output, shape index: {1}]  }
   0x1   :  { %320 = vset.pattern.permute.xlu0 %v321_v0  ;;  %v60_v1 = vld [vmem:[%s419_s1] sm:$0xff]  ;;  %299 = vmatprep.subr.bf16.mxu0 %v322_v2  ;;  %v61_v3 = vld [vmem:[%s419_s1 + $0x8] sm:$0xff]  ;;  %vm92_vm1 = vmpackc.low %vm323_vm0, %vm323_vm0  ;;  %vm324_vm3 = vmmov 0   ;;  %34 = vst.msk [vmem:[#allocation2] sm:$0xff] %vm33_vm2, %v322_v2  ;;  %v41_v9 = vlaneseq  ;;  %vm251_vm7 = vcmask 261120   ;;  %vm269_vm8 = vcmask 7168  }
   0x2   :  { %64 = vperm.xlu0 %320, %v60_v1   ;;  %v86_v4 = vld [vmem:[%s420_s3] sm:$0xf]  ;;  %v87_v5 = vld [vmem:[%s420_s3 + $0x4] sm:$0xf]  ;;  %301 = vmatprep.mubr.msk.bf16.mxu0 %vm324_vm3, %v322_v2  ;;  %35 = vst.msk [vmem:[#allocation2 + $0x8] sm:$0xff] %vm33_vm2, %v322_v2  ;;  %v160_v31 = vld [vmem:[%s423_s4 + $0x8] sm:$0xff] }
   0x3   :  { %v94_v6 = vsel %vm92_vm1, %v86_v4, 0  ;;  %v95_v7 = vsel %vm92_vm1, %v87_v5, 0  ;;  %v42_v10 = vshrl.u32 %v41_v9, 7  ;;  %v49_v11 = vand.u32 127, %v41_v9  ;;  %v290_v12 = vld [vmem:[%s421_s0] sm:$0xff]  }
   0x4   :  { %v283_v8 = vcombine.low %v94_v6, %v95_v7  ;;  %v291_v14 = vunpack.c.l.bf16 %v290_v12  ;;  %v292_v17 = vunpack.c.h.bf16 %v290_v12  ;;  %v282_v22 = vld [vmem:[%s422_s2] ss:$0 sm:$0xff] }
   0x5   :  { %vm52_vm4 = vcmp.eq.s32.totalorder %v42_v10, %v49_v11  ;;  %v43_v13 = vadd.s32 8, %v42_v10  ;;  %vm83_vm6 = vcmp.lt.s32.totalorder %v49_v11, 16  ;;  %v159_v30 = vld [vmem:[%s423_s4] sm:$0xff] }
   0x6   :  { %69 = vperm.xlu0 %320, %v61_v3   ;;  %300 = vmatpush3.bf16.msra.mxu0 %v283_v8  ;;  %v280_v15 = vsel %vm52_vm4, 1.0, %v322_v2  ;;  %v312_v32 = vpack.c.bf16 %v160_v31, %v159_v30  ;;  %v285_v43 = vld [vmem:[%s424_s5] ss:$0 sm:$0xff] }
   0x7   :  { %vm53_vm5 = vcmp.eq.s32.totalorder %v43_v13, %v49_v11  ;;  %v58_v16 = vadd.f32 %v291_v14, %v280_v15  ;;  %v288_v49 = vld [vmem:[%s425_s6] ss:$0 sm:$0xff] }
   0x8   :  { %v281_v18 = vsel %vm53_vm5, 1.0, %v322_v2  ;;  %313 = vmatprep.subr.bf16.mxu1 %v312_v32  ;;  %v96_v33 = vld [vmem:[#allocation2] sm:$0xff] }
   0x9   :  { %v59_v21 = vadd.f32 %v292_v17, %v281_v18  ;;  %315 = vmatpush3.bf16.msra.mxu1 %v312_v32  ;;  %v97_v35 = vld [vmem:[#allocation2 + $0x8] sm:$0xff] }
  0x81   :  { %v65_v19 = vpop.permute.xlu0 %64 }
  0x82   :  { %v72_v20 = vmul.f32 %v65_v19, %v58_v16 }
  0x84   :  { %v81_v24 = vmul.f32 %v282_v22, %v72_v20 }
  0x85   :  { %v70_v23 = vpop.permute.xlu0 %69 }
  0x86   :  { %v73_v25 = vmul.f32 %v70_v23, %v59_v21  ;;  %v84_v27 = vsel %vm83_vm6, %v81_v24, 0.0 }
  0x88   :  { %v82_v26 = vmul.f32 %v282_v22, %v73_v25 }
  0x8a   :  { %v85_v28 = vsel %vm83_vm6, %v82_v26, 0.0 }
  0x8b   :  { %v98_v29 = vpack.c.bf16 %v85_v28, %v84_v27 }
  0x8d   :  { %302 = vmatmul.mubr.msk.bf16.vlgmr.msra.gmra.mrb[0].mxu0 %vm33_vm2, %v98_v29 }
 0x160   :  { %v143_v34 = vpop.f32.mrb[0].mxu0 }
 0x161   :  { %v150_v36 = vadd.f32 %v143_v34, %v96_v33  ;;  %v303_v37 = vpop.f32.mrb[1].mxu0 }
 0x162   :  { %v146_v38 = vpop.f32.mrb[2].mxu0 }
 0x163   :  { %152 = vst.msk [vmem:[#allocation2] sm:$0xff] %vm33_vm2, %v150_v36  ;;  %v151_v39 = vadd.f32 %v146_v38, %v97_v35  ;;  %v304_v40 = vpop.f32.mrb[3].mxu0 }
 0x165   :  { %153 = vst.msk [vmem:[#allocation2 + $0x8] sm:$0xff] %vm33_vm2, %v151_v39 }
 0x16a   :  { %v157_v41 = vld [vmem:[#allocation2] sm:$0xff] }
 0x16b   :  { %309 = vmatprep.mubr.msk.f32.mxu1 %vm33_vm2, %v157_v41 }
 0x16c   :  { %v158_v42 = vld [vmem:[#allocation2 + $0x8] sm:$0xff] }
 0x16d   :  { %310 = vmatmul.mubr.msk.f32.vlgmr.msra.gmra.mrb[0].mxu1 %vm33_vm2, %v158_v42 }
 0x240   :  { %v311_v44 = vpop.f32.mrb[0].mxu1 }
 0x241   :  { %v246_v45 = vadd.f32 %v311_v44, %v285_v43  ;;  %v240_v46 = vpop.f32.mrb[1].mxu1 }
 0x242   :  { %v241_v47 = vadd.f32 %v285_v43, %v240_v46 }
 0x243   :  { %v250_v48 = vmax.f32 %v246_v45, 0.0 }
 0x244   :  { %v249_v50 = vmax.f32 %v241_v47, 0.0 }
 0x245   :  { %253 = vst.msk [vmem:[%s426_s7 + $0x8] sm:$0xff] %vm251_vm7, %v250_v48  ;;  %v262_v53 = vmul.f32 %v288_v49, %v250_v48 }
 0x246   :  { %v261_v51 = vmul.f32 %v288_v49, %v249_v50  ;;  %252 = vst.msk [vmem:[%s426_s7] sm:$0xff] %vm251_vm7, %v249_v50 }
 0x247   :  { %v266_v54 = vsel %vm251_vm7, %v262_v53, 0.0 }
 0x248   :  { %v263_v52 = vsel %vm251_vm7, %v261_v51, 0.0 }
 0x249   :  { %264 = vadd.xlane.f32.xlu1 %v263_v52 }
 0x24d   :  { %267 = vadd.xlane.f32.xlu1 %v266_v54 }
 0x2d6   :  { %v265_v55 = vpop.xlane.xlu1 %264 }
 0x2d7   :  { %270 = vst.msk [vmem:[%s427_s8] sm:$0xff] %vm269_vm8, %v265_v55 }
 0x2da   :  { %v268_v56 = vpop.xlane.xlu1 %267 }
 0x2db   :  { %271 = vst.msk [vmem:[%s427_s8 + $0x8] sm:$0xff] %vm269_vm8, %v268_v56 }

// kernel: sagnet_forward.8
= control target key start
LH: loop header
LB: loop body
LE: loop exit
PB: predicated region body
PF: predicated region fallthrough
CT: control target
= control target key end

     0   :  { %v42_v0 = vlaneseq  ;;  %v339_v1 = vmov 0   ;;  %v340_v3 = vmov 0.0   ;;  %vm341_vm1 = vmmov 1   ;;  %s452_s1 = inlined_call_operand.vmem [shape: f32[13,1], index: 1, kind: input, shape index: {}]   ;;  %s453_s3 = inlined_call_operand.vmem [shape: bf16[13,32], index: 3, kind: input, shape index: {}]   ;;  %s454_s0 = inlined_call_operand.vmem [shape: bf16[13,13], index: 0, kind: input, shape index: {}]   ;;  %s455_s2 = inlined_call_operand.vmem [shape: f32[1,13], index: 2, kind: input, shape index: {}]   ;;  %s456_s4 = inlined_call_operand.vmem [shape: f32[32,32], index: 4, kind: input, shape index: {}]   ;;  %s457_s5 = inlined_call_operand.vmem [shape: f32[1,32], index: 5, kind: input, shape index: {}]   ;;  %s458_s6 = inlined_call_operand.vmem [shape: f32[1,32], index: 6, kind: input, shape index: {}]   ;;  %s459_s7 = inlined_call_operand.vmem [shape: f32[13,32], index: 7, kind: output, shape index: {0}]   ;;  %s460_s8 = inlined_call_operand.vmem [shape: f32[13,1], index: 8, kind: output, shape index: {1}]  }
   0x1   :  { %338 = vset.pattern.permute.xlu0 %v339_v1  ;;  %v61_v2 = vld [vmem:[%s452_s1] sm:$0xff]  ;;  %308 = vmatprep.subr.bf16.mxu0 %v340_v3  ;;  %v62_v6 = vld [vmem:[%s452_s1 + $0x8] sm:$0x1f]  ;;  %vm93_vm2 = vmpackc.low %vm341_vm1, %vm341_vm1  ;;  %vm109_vm3 = vcmask 1045504   ;;  %vm110_vm6 = vcmask 1046528   ;;  %v342_v11 = vmov 65535  }
   0x2   :  { %65 = vperm.xlu0 %338, %v61_v2   ;;  %v43_v4 = vshrl.u32 %v42_v0, 7  ;;  %v50_v5 = vand.u32 127, %v42_v0  ;;  %v87_v8 = vld [vmem:[%s453_s3] sm:$0xf]  ;;  %v88_v9 = vld [vmem:[%s453_s3 + $0x4] sm:$0x7] }
   0x3   :  { %v95_v10 = vsel %vm93_vm2, %v87_v8, 0  ;;  %v111_v12 = vsel %vm109_vm3, 4294967295, %v342_v11  ;;  %vm343_vm8 = vmmov 0   ;;  %vm33_vm9 = vcmask 261120   ;;  %v37_v17 = vld [vmem:[%s454_s0] sm:$0xf] }
   0x4   :  { %vm53_vm0 = vcmp.eq.s32.totalorder %v43_v4, %v50_v5  ;;  %v44_v7 = vadd.s32 8, %v43_v4  ;;  %v112_v14 = vsel %vm110_vm6, %v111_v12, 0  ;;  %310 = vmatprep.mubr.msk.bf16.mxu0 %vm343_vm8, %v340_v3  ;;  %34 = vst.msk [vmem:[#allocation2] sm:$0xff] %vm33_vm9, %v340_v3  ;;  %v39_v18 = vunpack.c.l.bf16 %v37_v17  ;;  %v38_v20 = vld [vmem:[%s454_s0 + $0x4] sm:$0x7]  ;;  %v169_v36 = vld [vmem:[%s456_s4 + $0x8] sm:$0xff] }
   0x5   :  { %v291_v19 = vsel %vm53_vm0, 1.0, %v340_v3  ;;  %v40_v22 = vunpack.c.l.bf16 %v38_v20  ;;  %v293_v24 = vld [vmem:[%s455_s2] ss:$0 sm:$0xff]  ;;  %vm84_vm10 = vcmp.lt.s32.totalorder %v50_v5, 13  ;;  %vm105_vm11 = vcmask 105472   ;;  %v170_v38 = vld [vmem:[%s456_s4 + $0x10] sm:$0xff] }
   0x6   :  { %70 = vperm.xlu0 %338, %v62_v6   ;;  %vm54_vm4 = vcmp.eq.s32.totalorder %v44_v7, %v50_v5  ;;  %vm92_vm5 = vcmp.lt.s32.totalorder %v44_v7, 13  ;;  %v59_v21 = vadd.f32 %v291_v19, %v39_v18  ;;  %vm35_vm12 = vcmask 258048   ;;  %v168_v35 = vld [vmem:[%s456_s4] sm:$0xff]  ;;  %v171_v39 = vld [vmem:[%s456_s4 + $0x18] sm:$0xff] }
   0x7   :  { %vm94_vm7 = vmpackc.low %vm92_vm5, %vm92_vm5  ;;  %v292_v23 = vsel %vm54_vm4, 1.0, %v340_v3  ;;  %36 = vst.msk [vmem:[#allocation2 + $0x8] sm:$0x1f] %vm35_vm12, %v340_v3  ;;  %v325_v37 = vpack.c.bf16 %v169_v36, %v168_v35  ;;  %v329_v40 = vpack.c.bf16 %v171_v39, %v170_v38  ;;  %v296_v51 = vld [vmem:[%s457_s5] ss:$0 sm:$0xff]  ;;  %vm279_vm13 = vcmask 7168  }
   0x8   :  { %v96_v13 = vsel %vm94_vm7, %v88_v9, 0  ;;  %v60_v27 = vadd.f32 %v292_v23, %v40_v22  ;;  %v299_v57 = vld [vmem:[%s458_s6] ss:$0 sm:$0xff]  ;;  %vm281_vm14 = vcmask 4096  }
   0x9   :  { %v294_v15 = vcombine.low %v95_v10, %v96_v13  ;;  %326 = vmatprep.subr.bf16.mxu1 %v325_v37 }
   0xa   :  { %328 = vmatpush3.bf16.msra.mxu1 %v325_v37 }
   0xb   :  { %v114_v16 = vand.u32 %v294_v15, %v112_v14  ;;  %330 = vmatprep.subr.bf16.mxu1 %v329_v40  ;;  %v97_v41 = vld [vmem:[#allocation2] sm:$0xff] }
   0xd   :  { %309 = vmatpush3.bf16.msra.mxu0 %v114_v16 }
   0xe   :  { %332 = vmatpush3.bf16.msra.mxu1 %v329_v40  ;;  %v98_v43 = vld [vmem:[#allocation2 + $0x8] sm:$0x1f] }
  0x81   :  { %v66_v25 = vpop.permute.xlu0 %65 }
  0x82   :  { %v73_v26 = vmul.f32 %v66_v25, %v59_v21 }
  0x84   :  { %v82_v28 = vmul.f32 %v293_v24, %v73_v26 }
  0x85   :  { %v71_v29 = vpop.permute.xlu0 %70 }
  0x86   :  { %v85_v30 = vsel %vm84_vm10, %v82_v28, 0.0  ;;  %v74_v31 = vmul.f32 %v71_v29, %v60_v27 }
  0x88   :  { %v83_v32 = vmul.f32 %v293_v24, %v74_v31 }
  0x8a   :  { %v86_v33 = vsel %vm84_vm10, %v83_v32, 0.0 }
  0x8b   :  { %v99_v34 = vpack.c.bf16 %v86_v33, %v85_v30 }
  0x8d   :  { %311 = vmatmul.mubr.msk.bf16.vlgmr.msra.gmra.mrb[0].mxu0 %vm105_vm11, %v99_v34 }
 0x160   :  { %v150_v42 = vpop.f32.mrb[0].mxu0 }
 0x161   :  { %v157_v44 = vadd.f32 %v150_v42, %v97_v41  ;;  %v312_v45 = vpop.f32.mrb[1].mxu0 }
 0x162   :  { %v153_v46 = vpop.f32.mrb[2].mxu0 }
 0x163   :  { %160 = vst.msk [vmem:[#allocation2] sm:$0xff] %vm33_vm9, %v157_v44  ;;  %v158_v47 = vadd.f32 %v153_v46, %v98_v43  ;;  %v313_v48 = vpop.f32.mrb[3].mxu0 }
 0x165   :  { %162 = vst.msk [vmem:[#allocation2 + $0x8] sm:$0x1f] %vm35_vm12, %v158_v47 }
 0x16a   :  { %v166_v49 = vld [vmem:[#allocation2] sm:$0xff] }
 0x16b   :  { %322 = vmatprep.mubr.msk.f32.mxu1 %vm33_vm9, %v166_v49 }
 0x16c   :  { %v167_v50 = vld [vmem:[#allocation2 + $0x8] sm:$0x1f] }
 0x16d   :  { %323 = vmatmul.mubr.msk.f32.vlgmr.msra.gmra.mrb[0].mxu1 %vm33_vm9, %v167_v50 }
 0x240   :  { %v324_v52 = vpop.f32.mrb[0].mxu1 }
 0x241   :  { %v257_v53 = vadd.f32 %v324_v52, %v296_v51  ;;  %v251_v54 = vpop.f32.mrb[1].mxu1 }
 0x242   :  { %v252_v55 = vadd.f32 %v296_v51, %v251_v54 }
 0x243   :  { %v261_v56 = vmax.f32 %v257_v53, 0.0 }
 0x244   :  { %v260_v58 = vmax.f32 %v252_v55, 0.0 }
 0x245   :  { %263 = vst.msk [vmem:[%s459_s7 + $0x8] sm:$0x1f] %vm35_vm12, %v261_v56  ;;  %v272_v61 = vmul.f32 %v299_v57, %v261_v56 }
 0x246   :  { %262 = vst.msk [vmem:[%s459_s7] sm:$0xff] %vm33_vm9, %v260_v58  ;;  %v271_v59 = vmul.f32 %v299_v57, %v260_v58 }
 0x247   :  { %v276_v62 = vsel %vm35_vm12, %v272_v61, 0.0 }
 0x248   :  { %v273_v60 = vsel %vm33_vm9, %v271_v59, 0.0 }
 0x249   :  { %274 = vadd.xlane.f32.xlu1 %v273_v60 }
 0x24d   :  { %277 = vadd.xlane.f32.xlu1 %v276_v62 }
 0x2d6   :  { %v275_v63 = vpop.xlane.xlu1 %274 }
 0x2d7   :  { %280 = vst.msk [vmem:[%s460_s8] sm:$0xff] %vm279_vm13, %v275_v63 }
 0x2da   :  { %v278_v0 = vpop.xlane.xlu1 %277 }
 0x2db   :  { %282 = vst.msk [vmem:[%s460_s8 + $0x8] sm:$0x1f] %vm281_vm14, %v278_v0 }

// kernel: sagnet_forward.9
= control target key start
LH: loop header
LB: loop body
LE: loop exit
PB: predicated region body
PF: predicated region fallthrough
CT: control target
= control target key end

     0   :  { %v126_v0 = vmov 0   ;;  %vm25_vm0 = vcmask 7168   ;;  %v127_v3 = vmov 0.0   ;;  %v34_v4 = vlaneseq  ;;  %s191_s1 = inlined_call_operand.vmem [shape: f32[13,1], index: 1, kind: input, shape index: {}]   ;;  %s192_s0 = inlined_call_operand.vmem [shape: bf16[13,13], index: 0, kind: input, shape index: {}]   ;;  %s193_s2 = inlined_call_operand.vmem [shape: f32[1,13], index: 2, kind: input, shape index: {}]   ;;  %s194_s3 = inlined_call_operand.vmem [shape: f32[1,13], index: 3, kind: input, shape index: {}]   ;;  %s195_s4 = inlined_call_operand.<no memory space> [shape: f32[1], index: 4, kind: input, shape index: {}]   ;;  %s196_s5 = inlined_call_operand.vmem [shape: f32[13,1], index: 5, kind: output, shape index: {}]  }
   0x1   :  { %125 = vset.pattern.permute.xlu0 %v126_v0  ;;  %v53_v1 = vld [vmem:[%s191_s1] sm:$0xff]  ;;  %v54_v2 = vld [vmem:[%s191_s1 + $0x8] sm:$0x1f]  ;;  %26 = vst.msk [vmem:[#allocation2] sm:$0xff] %vm25_vm0, %v127_v3  ;;  %vm90_vm4 = vcmask 105472   ;;  %vm94_vm5 = vcmask 102400   ;;  %v110_v36 = vstv %s195_s4 }
   0x2   :  { %57 = vperm.xlu0 %125, %v53_v1   ;;  %v35_v5 = vshrl.u32 %v34_v4, 7  ;;  %v42_v6 = vand.u32 127, %v34_v4  ;;  %v29_v7 = vld [vmem:[%s192_s0] sm:$0xf]  ;;  %v30_v11 = vld [vmem:[%s192_s0 + $0x4] sm:$0x7] }
   0x3   :  { %v31_v9 = vunpack.c.l.bf16 %v29_v7  ;;  %v32_v13 = vunpack.c.l.bf16 %v30_v11  ;;  %v121_v15 = vld [vmem:[%s193_s2] ss:$0 sm:$0xff]  ;;  %vm27_vm6 = vcmask 4096  }
   0x4   :  { %vm45_vm1 = vcmp.eq.s32.totalorder %v35_v5, %v42_v6  ;;  %v36_v8 = vadd.s32 8, %v35_v5  ;;  %v122_v19 = vld [vmem:[%s194_s3] ss:$0 sm:$0xff]  ;;  %vm76_vm3 = vcmp.lt.s32.totalorder %v42_v6, 13  ;;  %28 = vst.msk [vmem:[#allocation2 + $0x8] sm:$0x1f] %vm27_vm6, %v127_v3 }
   0x5   :  { %v119_v10 = vsel %vm45_vm1, 1.0, %v127_v3 }
   0x6   :  { %62 = vperm.xlu0 %125, %v54_v2   ;;  %vm46_vm2 = vcmp.eq.s32.totalorder %v36_v8, %v42_v6  ;;  %v51_v12 = vadd.f32 %v119_v10, %v31_v9 }
   0x7   :  { %v120_v14 = vsel %vm46_vm2, 1.0, %v127_v3 }
   0x8   :  { %v52_v18 = vadd.f32 %v120_v14, %v32_v13  ;;  %v88_v30 = vld [vmem:[#allocation2] sm:$0xff] }
   0xb   :  { %v89_v33 = vld [vmem:[#allocation2 + $0x8] sm:$0x1f] }
  0x81   :  { %v58_v16 = vpop.permute.xlu0 %57 }
  0x82   :  { %v65_v17 = vmul.f32 %v58_v16, %v51_v12 }
  0x84   :  { %v74_v20 = vmul.f32 %v121_v15, %v65_v17 }
  0x85   :  { %v63_v21 = vpop.permute.xlu0 %62 }
  0x86   :  { %v66_v22 = vmul.f32 %v63_v21, %v52_v18  ;;  %v84_v23 = vmul.f32 %v122_v19, %v74_v20 }
  0x88   :  { %v75_v24 = vmul.f32 %v121_v15, %v66_v22  ;;  %v86_v25 = vsel %vm76_vm3, %v84_v23, 0.0 }
  0x89   :  { %v91_v26 = vsel %vm90_vm4, %v86_v25, 0.0 }
  0x8a   :  { %92 = vadd.xlane.f32.xlu1 %v91_v26  ;;  %v85_v27 = vmul.f32 %v122_v19, %v75_v24 }
  0x8c   :  { %v87_v28 = vsel %vm76_vm3, %v85_v27, 0.0 }
  0x8d   :  { %v95_v29 = vsel %vm94_vm5, %v87_v28, 0.0 }
  0x8e   :  { %96 = vadd.xlane.f32.xlu1 %v95_v29 }
 0x117   :  { %v93_v31 = vpop.xlane.xlu1 %92 }
 0x118   :  { %v98_v32 = vadd.f32 %v93_v31, %v88_v30 }
 0x11a   :  { %101 = vst.msk [vmem:[#allocation2] sm:$0xff] %vm25_vm0, %v98_v32 }
 0x11b   :  { %v97_v34 = vpop.xlane.xlu1 %96 }
 0x11c   :  { %v99_v35 = vadd.f32 %v97_v34, %v89_v33 }
 0x11e   :  { %103 = vst.msk [vmem:[#allocation2 + $0x8] sm:$0x1f] %vm27_vm6, %v99_v35 }
 0x121   :  { %v107_v37 = vld [vmem:[#allocation2] sm:$0xff] }
 0x122   :  { %v111_v38 = vadd.f32 %v110_v36, %v107_v37 }
 0x124   :  { %113 = vst.msk [vmem:[%s196_s5] sm:$0xff] %vm25_vm0, %v111_v38 }
 0x125   :  { %v108_v39 = vld [vmem:[#allocation2 + $0x8] sm:$0x1f] }
 0x126   :  { %v112_v40 = vadd.f32 %v110_v36, %v108_v39 }
 0x128   :  { %114 = vst.msk [vmem:[%s196_s5 + $0x8] sm:$0x1f] %vm27_vm6, %v112_v40 }

// kernel: sagnet_forward.11
= control target key start
LH: loop header
LB: loop body
LE: loop exit
PB: predicated region body
PF: predicated region fallthrough
CT: control target
= control target key end

     0   :  { %v126_v0 = vmov 0   ;;  %vm25_vm0 = vcmask 7168   ;;  %v127_v3 = vmov 0.0   ;;  %v34_v4 = vlaneseq  ;;  %s191_s1 = inlined_call_operand.vmem [shape: f32[11,1], index: 1, kind: input, shape index: {}]   ;;  %s192_s0 = inlined_call_operand.vmem [shape: bf16[11,11], index: 0, kind: input, shape index: {}]   ;;  %s193_s2 = inlined_call_operand.vmem [shape: f32[1,11], index: 2, kind: input, shape index: {}]   ;;  %s194_s3 = inlined_call_operand.vmem [shape: f32[1,11], index: 3, kind: input, shape index: {}]   ;;  %s195_s4 = inlined_call_operand.<no memory space> [shape: f32[1], index: 4, kind: input, shape index: {}]   ;;  %s196_s5 = inlined_call_operand.vmem [shape: f32[11,1], index: 5, kind: output, shape index: {}]  }
   0x1   :  { %125 = vset.pattern.permute.xlu0 %v126_v0  ;;  %v53_v1 = vld [vmem:[%s191_s1] sm:$0xff]  ;;  %v54_v2 = vld [vmem:[%s191_s1 + $0x8] sm:$0x7]  ;;  %26 = vst.msk [vmem:[#allocation2] sm:$0xff] %vm25_vm0, %v127_v3  ;;  %vm90_vm4 = vcmask 89088   ;;  %vm94_vm5 = vcmask 83968   ;;  %v110_v36 = vstv %s195_s4 }
   0x2   :  { %57 = vperm.xlu0 %125, %v53_v1   ;;  %v35_v5 = vshrl.u32 %v34_v4, 7  ;;  %v42_v6 = vand.u32 127, %v34_v4  ;;  %v29_v7 = vld [vmem:[%s192_s0] sm:$0xf]  ;;  %v30_v11 = vld [vmem:[%s192_s0 + $0x4] sm:$0x3] }
   0x3   :  { %v31_v9 = vunpack.c.l.bf16 %v29_v7  ;;  %v32_v13 = vunpack.c.l.bf16 %v30_v11  ;;  %v121_v15 = vld [vmem:[%s193_s2] ss:$0 sm:$0xff]  ;;  %vm27_vm6 = vcmask 2048  }
   0x4   :  { %vm45_vm1 = vcmp.eq.s32.totalorder %v35_v5, %v42_v6  ;;  %v36_v8 = vadd.s32 8, %v35_v5  ;;  %v122_v19 = vld [vmem:[%s194_s3] ss:$0 sm:$0xff]  ;;  %vm76_vm3 = vcmp.lt.s32.totalorder %v42_v6, 11  ;;  %28 = vst.msk [vmem:[#allocation2 + $0x8] sm:$0x7] %vm27_vm6, %v127_v3 }
   0x5   :  { %v119_v10 = vsel %vm45_vm1, 1.0, %v127_v3 }
   0x6   :  { %62 = vperm.xlu0 %125, %v54_v2   ;;  %vm46_vm2 = vcmp.eq.s32.totalorder %v36_v8, %v42_v6  ;;  %v51_v12 = vadd.f32 %v119_v10, %v31_v9 }
   0x7   :  { %v120_v14 = vsel %vm46_vm2, 1.0, %v127_v3 }
   0x8   :  { %v52_v18 = vadd.f32 %v120_v14, %v32_v13  ;;  %v88_v30 = vld [vmem:[#allocation2] sm:$0xff] }
   0xb   :  { %v89_v33 = vld [vmem:[#allocation2 + $0x8] sm:$0x7] }
  0x81   :  { %v58_v16 = vpop.permute.xlu0 %57 }
  0x82   :  { %v65_v17 = vmul.f32 %v58_v16, %v51_v12 }
  0x84   :  { %v74_v20 = vmul.f32 %v121_v15, %v65_v17 }
  0x85   :  { %v63_v21 = vpop.permute.xlu0 %62 }
  0x86   :  { %v66_v22 = vmul.f32 %v63_v21, %v52_v18  ;;  %v84_v23 = vmul.f32 %v122_v19, %v74_v20 }
  0x88   :  { %v75_v24 = vmul.f32 %v121_v15, %v66_v22  ;;  %v86_v25 = vsel %vm76_vm3, %v84_v23, 0.0 }
  0x89   :  { %v91_v26 = vsel %vm90_vm4, %v86_v25, 0.0 }
  0x8a   :  { %92 = vadd.xlane.f32.xlu1 %v91_v26  ;;  %v85_v27 = vmul.f32 %v122_v19, %v75_v24 }
  0x8c   :  { %v87_v28 = vsel %vm76_vm3, %v85_v27, 0.0 }
  0x8d   :  { %v95_v29 = vsel %vm94_vm5, %v87_v28, 0.0 }
  0x8e   :  { %96 = vadd.xlane.f32.xlu1 %v95_v29 }
 0x117   :  { %v93_v31 = vpop.xlane.xlu1 %92 }
 0x118   :  { %v98_v32 = vadd.f32 %v93_v31, %v88_v30 }
 0x11a   :  { %101 = vst.msk [vmem:[#allocation2] sm:$0xff] %vm25_vm0, %v98_v32 }
 0x11b   :  { %v97_v34 = vpop.xlane.xlu1 %96 }
 0x11c   :  { %v99_v35 = vadd.f32 %v97_v34, %v89_v33 }
 0x11e   :  { %103 = vst.msk [vmem:[#allocation2 + $0x8] sm:$0x7] %vm27_vm6, %v99_v35 }
 0x121   :  { %v107_v37 = vld [vmem:[#allocation2] sm:$0xff] }
 0x122   :  { %v111_v38 = vadd.f32 %v110_v36, %v107_v37 }
 0x124   :  { %113 = vst.msk [vmem:[%s196_s5] sm:$0xff] %vm25_vm0, %v111_v38 }
 0x125   :  { %v108_v39 = vld [vmem:[#allocation2 + $0x8] sm:$0x7] }
 0x126   :  { %v112_v40 = vadd.f32 %v110_v36, %v108_v39 }
 0x128   :  { %114 = vst.msk [vmem:[%s196_s5 + $0x8] sm:$0x7] %vm27_vm6, %v112_v40 }

// kernel: sagnet_forward.10
= control target key start
LH: loop header
LB: loop body
LE: loop exit
PB: predicated region body
PF: predicated region fallthrough
CT: control target
= control target key end

     0   :  { %v42_v0 = vlaneseq  ;;  %v339_v1 = vmov 0   ;;  %v340_v3 = vmov 0.0   ;;  %vm341_vm1 = vmmov 1   ;;  %s452_s1 = inlined_call_operand.vmem [shape: f32[11,1], index: 1, kind: input, shape index: {}]   ;;  %s453_s3 = inlined_call_operand.vmem [shape: bf16[11,32], index: 3, kind: input, shape index: {}]   ;;  %s454_s0 = inlined_call_operand.vmem [shape: bf16[11,11], index: 0, kind: input, shape index: {}]   ;;  %s455_s2 = inlined_call_operand.vmem [shape: f32[1,11], index: 2, kind: input, shape index: {}]   ;;  %s456_s4 = inlined_call_operand.vmem [shape: f32[32,32], index: 4, kind: input, shape index: {}]   ;;  %s457_s5 = inlined_call_operand.vmem [shape: f32[1,32], index: 5, kind: input, shape index: {}]   ;;  %s458_s6 = inlined_call_operand.vmem [shape: f32[1,32], index: 6, kind: input, shape index: {}]   ;;  %s459_s7 = inlined_call_operand.vmem [shape: f32[11,32], index: 7, kind: output, shape index: {0}]   ;;  %s460_s8 = inlined_call_operand.vmem [shape: f32[11,1], index: 8, kind: output, shape index: {1}]  }
   0x1   :  { %338 = vset.pattern.permute.xlu0 %v339_v1  ;;  %v61_v2 = vld [vmem:[%s452_s1] sm:$0xff]  ;;  %308 = vmatprep.subr.bf16.mxu0 %v340_v3  ;;  %v62_v6 = vld [vmem:[%s452_s1 + $0x8] sm:$0x7]  ;;  %vm93_vm2 = vmpackc.low %vm341_vm1, %vm341_vm1  ;;  %vm109_vm3 = vcmask 1044480   ;;  %vm110_vm6 = vcmask 1045504   ;;  %v342_v11 = vmov 65535  }
   0x2   :  { %65 = vperm.xlu0 %338, %v61_v2   ;;  %v43_v4 = vshrl.u32 %v42_v0, 7  ;;  %v50_v5 = vand.u32 127, %v42_v0  ;;  %v87_v8 = vld [vmem:[%s453_s3] sm:$0xf]  ;;  %v88_v9 = vld [vmem:[%s453_s3 + $0x4] sm:$0x3] }
   0x3   :  { %v95_v10 = vsel %vm93_vm2, %v87_v8, 0  ;;  %v111_v12 = vsel %vm109_vm3, 4294967295, %v342_v11  ;;  %vm343_vm8 = vmmov 0   ;;  %vm33_vm9 = vcmask 261120   ;;  %v37_v17 = vld [vmem:[%s454_s0] sm:$0xf] }
   0x4   :  { %vm53_vm0 = vcmp.eq.s32.totalorder %v43_v4, %v50_v5  ;;  %v44_v7 = vadd.s32 8, %v43_v4  ;;  %v112_v14 = vsel %vm110_vm6, %v111_v12, 0  ;;  %310 = vmatprep.mubr.msk.bf16.mxu0 %vm343_vm8, %v340_v3  ;;  %34 = vst.msk [vmem:[#allocation2] sm:$0xff] %vm33_vm9, %v340_v3  ;;  %v39_v18 = vunpack.c.l.bf16 %v37_v17  ;;  %v38_v20 = vld [vmem:[%s454_s0 + $0x4] sm:$0x3]  ;;  %v169_v36 = vld [vmem:[%s456_s4 + $0x8] sm:$0xff] }
   0x5   :  { %v291_v19 = vsel %vm53_vm0, 1.0, %v340_v3  ;;  %v40_v22 = vunpack.c.l.bf16 %v38_v20  ;;  %v293_v24 = vld [vmem:[%s455_s2] ss:$0 sm:$0xff]  ;;  %vm84_vm10 = vcmp.lt.s32.totalorder %v50_v5, 11  ;;  %vm105_vm11 = vcmask 89088   ;;  %v170_v38 = vld [vmem:[%s456_s4 + $0x10] sm:$0xff] }
   0x6   :  { %70 = vperm.xlu0 %338, %v62_v6   ;;  %vm54_vm4 = vcmp.eq.s32.totalorder %v44_v7, %v50_v5  ;;  %vm92_vm5 = vcmp.lt.s32.totalorder %v44_v7, 11  ;;  %v59_v21 = vadd.f32 %v291_v19, %v39_v18  ;;  %vm35_vm12 = vcmask 256000   ;;  %v168_v35 = vld [vmem:[%s456_s4] sm:$0xff]  ;;  %v171_v39 = vld [vmem:[%s456_s4 + $0x18] sm:$0xff] }
   0x7   :  { %vm94_vm7 = vmpackc.low %vm92_vm5, %vm92_vm5  ;;  %v292_v23 = vsel %vm54_vm4, 1.0, %v340_v3  ;;  %36 = vst.msk [vmem:[#allocation2 + $0x8] sm:$0x7] %vm35_vm12, %v340_v3  ;;  %v325_v37 = vpack.c.bf16 %v169_v36, %v168_v35  ;;  %v329_v40 = vpack.c.bf16 %v171_v39, %v170_v38  ;;  %v296_v51 = vld [vmem:[%s457_s5] ss:$0 sm:$0xff]  ;;  %vm279_vm13 = vcmask 7168  }
   0x8   :  { %v96_v13 = vsel %vm94_vm7, %v88_v9, 0  ;;  %v60_v27 = vadd.f32 %v292_v23, %v40_v22  ;;  %v299_v57 = vld [vmem:[%s458_s6] ss:$0 sm:$0xff]  ;;  %vm281_vm14 = vcmask 2048  }
   0x9   :  { %v294_v15 = vcombine.low %v95_v10, %v96_v13  ;;  %326 = vmatprep.subr.bf16.mxu1 %v325_v37 }
   0xa   :  { %328 = vmatpush3.bf16.msra.mxu1 %v325_v37 }
   0xb   :  { %v114_v16 = vand.u32 %v294_v15, %v112_v14  ;;  %330 = vmatprep.subr.bf16.mxu1 %v329_v40  ;;  %v97_v41 = vld [vmem:[#allocation2] sm:$0xff] }
   0xd   :  { %309 = vmatpush3.bf16.msra.mxu0 %v114_v16 }
   0xe   :  { %332 = vmatpush3.bf16.msra.mxu1 %v329_v40  ;;  %v98_v43 = vld [vmem:[#allocation2 + $0x8] sm:$0x7] }
  0x81   :  { %v66_v25 = vpop.permute.xlu0 %65 }
  0x82   :  { %v73_v26 = vmul.f32 %v66_v25, %v59_v21 }
  0x84   :  { %v82_v28 = vmul.f32 %v293_v24, %v73_v26 }
  0x85   :  { %v71_v29 = vpop.permute.xlu0 %70 }
  0x86   :  { %v85_v30 = vsel %vm84_vm10, %v82_v28, 0.0  ;;  %v74_v31 = vmul.f32 %v71_v29, %v60_v27 }
  0x88   :  { %v83_v32 = vmul.f32 %v293_v24, %v74_v31 }
  0x8a   :  { %v86_v33 = vsel %vm84_vm10, %v83_v32, 0.0 }
  0x8b   :  { %v99_v34 = vpack.c.bf16 %v86_v33, %v85_v30 }
  0x8d   :  { %311 = vmatmul.mubr.msk.bf16.vlgmr.msra.gmra.mrb[0].mxu0 %vm105_vm11, %v99_v34 }
 0x160   :  { %v150_v42 = vpop.f32.mrb[0].mxu0 }
 0x161   :  { %v157_v44 = vadd.f32 %v150_v42, %v97_v41  ;;  %v312_v45 = vpop.f32.mrb[1].mxu0 }
 0x162   :  { %v153_v46 = vpop.f32.mrb[2].mxu0 }
 0x163   :  { %160 = vst.msk [vmem:[#allocation2] sm:$0xff] %vm33_vm9, %v157_v44  ;;  %v158_v47 = vadd.f32 %v153_v46, %v98_v43  ;;  %v313_v48 = vpop.f32.mrb[3].mxu0 }
 0x165   :  { %162 = vst.msk [vmem:[#allocation2 + $0x8] sm:$0x7] %vm35_vm12, %v158_v47 }
 0x16a   :  { %v166_v49 = vld [vmem:[#allocation2] sm:$0xff] }
 0x16b   :  { %322 = vmatprep.mubr.msk.f32.mxu1 %vm33_vm9, %v166_v49 }
 0x16c   :  { %v167_v50 = vld [vmem:[#allocation2 + $0x8] sm:$0x7] }
 0x16d   :  { %323 = vmatmul.mubr.msk.f32.vlgmr.msra.gmra.mrb[0].mxu1 %vm33_vm9, %v167_v50 }
 0x240   :  { %v324_v52 = vpop.f32.mrb[0].mxu1 }
 0x241   :  { %v257_v53 = vadd.f32 %v324_v52, %v296_v51  ;;  %v251_v54 = vpop.f32.mrb[1].mxu1 }
 0x242   :  { %v252_v55 = vadd.f32 %v296_v51, %v251_v54 }
 0x243   :  { %v261_v56 = vmax.f32 %v257_v53, 0.0 }
 0x244   :  { %v260_v58 = vmax.f32 %v252_v55, 0.0 }
 0x245   :  { %263 = vst.msk [vmem:[%s459_s7 + $0x8] sm:$0x7] %vm35_vm12, %v261_v56  ;;  %v272_v61 = vmul.f32 %v299_v57, %v261_v56 }
 0x246   :  { %262 = vst.msk [vmem:[%s459_s7] sm:$0xff] %vm33_vm9, %v260_v58  ;;  %v271_v59 = vmul.f32 %v299_v57, %v260_v58 }
 0x247   :  { %v276_v62 = vsel %vm35_vm12, %v272_v61, 0.0 }
 0x248   :  { %v273_v60 = vsel %vm33_vm9, %v271_v59, 0.0 }
 0x249   :  { %274 = vadd.xlane.f32.xlu1 %v273_v60 }
 0x24d   :  { %277 = vadd.xlane.f32.xlu1 %v276_v62 }
 0x2d6   :  { %v275_v63 = vpop.xlane.xlu1 %274 }
 0x2d7   :  { %280 = vst.msk [vmem:[%s460_s8] sm:$0xff] %vm279_vm13, %v275_v63 }
 0x2da   :  { %v278_v0 = vpop.xlane.xlu1 %277 }
 0x2db   :  { %282 = vst.msk [vmem:[%s460_s8 + $0x8] sm:$0x7] %vm281_vm14, %v278_v0 }

</bundles_post_ra>
